<compile_context>
chip_gen: v7x
topology: tpu7x:2x2x1
jax: 0.10.0
libtpu: 0.0.40
codegen_flags: <defaults>
</compile_context>

<pallas_src>
import functools

import jax
import jax.numpy as jnp
from jax.experimental import pallas as pl
from jax.experimental.pallas import tpu as pltpu


# ----------------------------------------------------------------------------
# Pallas kernel: 3x3 conv (BN folded) + LeakyReLU(0.1) + 1x1 conv, fused.
# ----------------------------------------------------------------------------
def _scale_pred_kernel(x_ref, w1_ref, b1_ref, w2_ref, b2_ref, o_ref, col_ref):
    # x_ref  : (1, H, W, C)     bf16 input tile (one batch element)
    # w1_ref : (9*C, Cm)        bf16 folded 3x3 conv + BN weight, im2col layout
    #                           (row index = (kh*3 + kw)*C + ci)
    # b1_ref : (1, Cm)          f32 folded conv1 + BN bias
    # w2_ref : (Cm, Co)         bf16 1x1 conv weight
    # b2_ref : (1, Co)          f32 1x1 conv bias
    # o_ref  : (1, H, W, Co)    f32 output tile
    # col_ref: (H, W, 9*C)      f32 VMEM scratch, im2col slab
    _, H, W, C = x_ref.shape
    Co = o_ref.shape[3]
    HW = H * W

    # Full-block load of the input tile; widen once for the slab assembly.
    xf = x_ref[0].astype(jnp.float32)                      # (H, W, C)

    # --- zero only the slab borders (2 rows + 2 cols), not the whole scratch.
    # Every tap's out-of-image region lies inside these strips (3x3, pad=1).
    z_row = jnp.zeros((1, W, 9 * C), jnp.float32)
    z_col = jnp.zeros((H, 1, 9 * C), jnp.float32)
    col_ref[0:1, :, :] = z_row
    col_ref[H - 1:H, :, :] = z_row
    col_ref[:, 0:1, :] = z_col
    col_ref[:, W - 1:W, :] = z_col

    # --- im2col: tap t = (dh, dw) holds x(h+dh, w+dw), zero outside image.
    for dh in (-1, 0, 1):
        for dw in (-1, 0, 1):
            t = (dh + 1) * 3 + (dw + 1)
            h0, h1 = max(0, -dh), H - max(0, dh)           # valid output rows
            w0, w1 = max(0, -dw), W - max(0, dw)           # valid output cols
            col_ref[h0:h1, w0:w1, t * C:(t + 1) * C] = (
                xf[h0 + dh:h1 + dh, w0 + dw:w1 + dw, :])

    # --- conv1: 3x3 (C -> Cm), BN folded, as ONE matmul with K = 9*C.
    col = col_ref[...].reshape(HW, 9 * C).astype(jnp.bfloat16)
    y1 = jnp.dot(col, w1_ref[...], preferred_element_type=jnp.float32)
    y1 = y1 + b1_ref[...]
    y1 = jnp.where(y1 > 0, y1, 0.1 * y1)                   # LeakyReLU(0.1), f32

    # --- conv2: 1x1 (Cm -> Co), bias only (no BN / activation).
    y2 = jnp.dot(y1.astype(jnp.bfloat16), w2_ref[...],
                 preferred_element_type=jnp.float32)
    y2 = y2 + b2_ref[...]

    o_ref[0] = y2.reshape(H, W, Co).astype(o_ref.dtype)


def _scale_pred_pallas(x_nhwc_bf16, w1, b1, w2, b2):
    N, H, W, C = x_nhwc_bf16.shape
    K9, Cm = w1.shape
    Co = w2.shape[1]
    return pl.pallas_call(
        _scale_pred_kernel,
        out_shape=jax.ShapeDtypeStruct((N, H, W, Co), jnp.float32),
        grid_spec=pltpu.PrefetchScalarGridSpec(
            num_scalar_prefetch=0,
            grid=(N,),
            in_specs=[
                pl.BlockSpec((1, H, W, C), lambda n: (n, 0, 0, 0)),
                pl.BlockSpec((K9, Cm), lambda n: (0, 0)),
                pl.BlockSpec((1, Cm), lambda n: (0, 0)),
                pl.BlockSpec((Cm, Co), lambda n: (0, 0)),
                pl.BlockSpec((1, Co), lambda n: (0, 0)),
            ],
            out_specs=pl.BlockSpec((1, H, W, Co), lambda n: (n, 0, 0, 0)),
            scratch_shapes=[pltpu.VMEM((H, W, 9 * C), jnp.float32)],
        ),
        compiler_params=pltpu.CompilerParams(
            dimension_semantics=("parallel",),
            vmem_limit_bytes=48 * 1024 * 1024),
    )(x_nhwc_bf16, w1, b1, w2, b2)


# ----------------------------------------------------------------------------
# Wrapper: NCHW in -> (N, 3, H, W, num_classes + 5) out, like the torch module.
# ----------------------------------------------------------------------------
@functools.partial(jax.jit, static_argnames=("num_classes",))
def scale_prediction(x_nchw, params, *, num_classes):
    w1, b1, w2, b2 = params
    N, C, H, W = x_nchw.shape
    # NCHW -> NHWC, cast to bf16 (halves activation DMA; MXU inputs are bf16).
    x = jnp.transpose(x_nchw, (0, 2, 3, 1)).astype(jnp.bfloat16)
    out = _scale_pred_pallas(x, w1, b1, w2, b2)            # (N, H, W, Co) f32
    out = out.reshape(N, H, W, 3, num_classes + 5)
    return jnp.transpose(out, (0, 3, 1, 2, 4))             # (N, 3, H, W, nc+5)


# ----------------------------------------------------------------------------
# Deterministic params (PyTorch shapes), BN folded into conv1, im2col layout.
# ----------------------------------------------------------------------------
def make_params(key, in_channels, num_classes, eps=1e-5):
    C, Cm, Co = in_channels, 2 * in_channels, (num_classes + 5) * 3
    ks = jax.random.split(key, 8)
    # conv1: Conv2d(C, Cm, 3, padding=1) -- torch weight (Cm, C, 3, 3)
    w1_t = 0.1 * jax.random.normal(ks[0], (Cm, C, 3, 3), jnp.float32)
    cb1 = 0.1 * jax.random.normal(ks[1], (Cm,), jnp.float32)
    # bn1: BatchNorm2d(Cm) (running statistics, inference-mode fold)
    g1 = 1.0 + 0.1 * jax.random.normal(ks[2], (Cm,), jnp.float32)
    be1 = 0.1 * jax.random.normal(ks[3], (Cm,), jnp.float32)
    m1 = 0.1 * jax.random.normal(ks[4], (Cm,), jnp.float32)
    v1 = jnp.abs(jax.random.normal(ks[5], (Cm,), jnp.float32)) + 0.5
    # conv2: Conv2d(Cm, Co, 1) -- torch weight (Co, Cm, 1, 1)
    w2_t = 0.1 * jax.random.normal(ks[6], (Co, Cm, 1, 1), jnp.float32)
    cb2 = 0.1 * jax.random.normal(ks[7], (Co,), jnp.float32)

    # Fold BN into conv1 and pre-reshape to the im2col slab (9*C, Cm), bf16.
    s1 = g1 / jnp.sqrt(v1 + eps)
    w1_hwio = jnp.transpose(w1_t, (2, 3, 1, 0)) * s1[None, None, None, :]
    w1_slab = w1_hwio.reshape(9 * C, Cm).astype(jnp.bfloat16)
    b1 = ((cb1 - m1) * s1 + be1)[None, :].astype(jnp.float32)

    w2_mat = jnp.transpose(w2_t[:, :, 0, 0], (1, 0)).astype(jnp.bfloat16)
    b2 = cb2[None, :].astype(jnp.float32)
    return (w1_slab, b1, w2_mat, b2)


# ----------------------------------------------------------------------------
# Pure-JAX reference (same folded bf16 params) for correctness checking.
# ----------------------------------------------------------------------------
def scale_prediction_ref(x_nchw, params, num_classes):
    w1_slab, b1, w2_mat, b2 = params
    N, C, H, W = x_nchw.shape
    x = jnp.transpose(x_nchw, (0, 2, 3, 1)).astype(jnp.bfloat16)
    w1_hwio = w1_slab.reshape(3, 3, C, -1)
    dn = ("NHWC", "HWIO", "NHWC")
    y = jax.lax.conv_general_dilated(
        x, w1_hwio, (1, 1), ((1, 1), (1, 1)), dimension_numbers=dn,
        preferred_element_type=jnp.float32) + b1.reshape(1, 1, 1, -1)
    y = jnp.where(y > 0, y, 0.1 * y)
    y = jax.lax.conv_general_dilated(
        y.astype(jnp.bfloat16), w2_mat.reshape(1, 1, *w2_mat.shape), (1, 1),
        "VALID", dimension_numbers=dn,
        preferred_element_type=jnp.float32) + b2.reshape(1, 1, 1, -1)
    y = y.reshape(N, H, W, 3, num_classes + 5)
    return jnp.transpose(y, (0, 3, 1, 2, 4))


if __name__ == "__main__":
    key = jax.random.PRNGKey(0)
    N, C, H, W = 2, 4, 16, 16        # small shapes consistent with the module
    num_classes = 2                  # Co = (2 + 5) * 3 = 21

    kx, kp = jax.random.split(key)
    x = jax.random.normal(kx, (N, C, H, W), jnp.float32)
    params = make_params(kp, C, num_classes)

    out = scale_prediction(x, params, num_classes=num_classes)
    out = jax.block_until_ready(out)

    ref = scale_prediction_ref(x, params, num_classes)
    assert out.shape == (N, 3, H, W, num_classes + 5), out.shape
    max_err = float(jnp.max(jnp.abs(out - ref)))
    assert jnp.allclose(out, ref, atol=5e-3, rtol=5e-3), max_err

    print("KERNEL_OK")
</pallas_src>

<mosaic_0001>
module attributes {stable_mosaic.version = 11 : i64} {
  func.func @_scale_pred_kernel(%arg0: i32, %arg1: memref<1x16x16x4xbf16, #tpu.memory_space<vmem>>, %arg2: memref<36x8xbf16, #tpu.memory_space<vmem>>, %arg3: memref<1x8xf32, #tpu.memory_space<vmem>>, %arg4: memref<8x21xbf16, #tpu.memory_space<vmem>>, %arg5: memref<1x21xf32, #tpu.memory_space<vmem>>, %arg6: memref<1x16x16x21xf32, #tpu.memory_space<vmem>>, %arg7: memref<16x16x36xf32, #tpu.memory_space<vmem>>) attributes {dimension_semantics = [#tpu.dimension_semantics<parallel>], iteration_bounds = array<i64: 2>, scalar_prefetch = 0 : i64, scratch_operands = 1 : i64, tpu.core_type = #tpu.core_type<tc>, window_params = [{transform_indices = @transform_0, window_bounds = array<i64: 1, 16, 16, 4>}, {pipeline_mode = #tpu.pipeline_mode<synchronous>, transform_indices = @transform_1, window_bounds = array<i64: 36, 8>}, {pipeline_mode = #tpu.pipeline_mode<synchronous>, transform_indices = @transform_2, window_bounds = array<i64: 1, 8>}, {pipeline_mode = #tpu.pipeline_mode<synchronous>, transform_indices = @transform_3, window_bounds = array<i64: 8, 21>}, {pipeline_mode = #tpu.pipeline_mode<synchronous>, transform_indices = @transform_4, window_bounds = array<i64: 1, 21>}, {transform_indices = @transform_5, window_bounds = array<i64: 1, 16, 16, 21>}]} {
    %c0 = arith.constant 0 : index
    %c0_0 = arith.constant 0 : index
    %c0_1 = arith.constant 0 : index
    %c0_2 = arith.constant 0 : index
    %0 = vector.load %arg1[%c0, %c0_0, %c0_1, %c0_2] : memref<1x16x16x4xbf16, #tpu.memory_space<vmem>>, vector<1x16x16x4xbf16>
    %1 = vector.shape_cast %0 : vector<1x16x16x4xbf16> to vector<16x16x4xbf16>
    %2 = arith.extf %1 : vector<16x16x4xbf16> to vector<16x16x4xf32>
    %cst = arith.constant 0.000000e+00 : f32
    %3 = vector.broadcast %cst : f32 to vector<1x16x36xf32>
    %cst_3 = arith.constant 0.000000e+00 : f32
    %4 = vector.broadcast %cst_3 : f32 to vector<16x1x36xf32>
    %c0_4 = arith.constant 0 : index
    %c0_5 = arith.constant 0 : index
    %c0_6 = arith.constant 0 : index
    %5 = vector.load %arg7[%c0_4, %c0_5, %c0_6] : memref<16x16x36xf32, #tpu.memory_space<vmem>>, vector<1x16x36xf32>
    tpu.vector_store %arg7[%c0_4, %c0_5, %c0_6], %3 {strides = array<i32>} : memref<16x16x36xf32, #tpu.memory_space<vmem>>, vector<1x16x36xf32>,
    %c15 = arith.constant 15 : index
    %c0_7 = arith.constant 0 : index
    %c0_8 = arith.constant 0 : index
    %6 = vector.load %arg7[%c15, %c0_7, %c0_8] : memref<16x16x36xf32, #tpu.memory_space<vmem>>, vector<1x16x36xf32>
    tpu.vector_store %arg7[%c15, %c0_7, %c0_8], %3 {strides = array<i32>} : memref<16x16x36xf32, #tpu.memory_space<vmem>>, vector<1x16x36xf32>,
    %c0_9 = arith.constant 0 : index
    %c0_10 = arith.constant 0 : index
    %c0_11 = arith.constant 0 : index
    %7 = vector.load %arg7[%c0_9, %c0_10, %c0_11] : memref<16x16x36xf32, #tpu.memory_space<vmem>>, vector<16x1x36xf32>
    tpu.vector_store %arg7[%c0_9, %c0_10, %c0_11], %4 {strides = array<i32>} : memref<16x16x36xf32, #tpu.memory_space<vmem>>, vector<16x1x36xf32>,
    %c0_12 = arith.constant 0 : index
    %c15_13 = arith.constant 15 : index
    %c0_14 = arith.constant 0 : index
    %8 = vector.load %arg7[%c0_12, %c15_13, %c0_14] : memref<16x16x36xf32, #tpu.memory_space<vmem>>, vector<16x1x36xf32>
    tpu.vector_store %arg7[%c0_12, %c15_13, %c0_14], %4 {strides = array<i32>} : memref<16x16x36xf32, #tpu.memory_space<vmem>>, vector<16x1x36xf32>,
    %9 = vector.extract_strided_slice %2 {offsets = [0, 0, 0], sizes = [15, 15, 4], strides = [1, 1, 1]} : vector<16x16x4xf32> to vector<15x15x4xf32>
    %c1 = arith.constant 1 : index
    %c1_15 = arith.constant 1 : index
    %c0_16 = arith.constant 0 : index
    %10 = vector.load %arg7[%c1, %c1_15, %c0_16] : memref<16x16x36xf32, #tpu.memory_space<vmem>>, vector<15x15x4xf32>
    tpu.vector_store %arg7[%c1, %c1_15, %c0_16], %9 {strides = array<i32>} : memref<16x16x36xf32, #tpu.memory_space<vmem>>, vector<15x15x4xf32>,
    %11 = vector.extract_strided_slice %2 {offsets = [0, 0, 0], sizes = [15, 16, 4], strides = [1, 1, 1]} : vector<16x16x4xf32> to vector<15x16x4xf32>
    %c1_17 = arith.constant 1 : index
    %c0_18 = arith.constant 0 : index
    %c4 = arith.constant 4 : index
    %12 = vector.load %arg7[%c1_17, %c0_18, %c4] : memref<16x16x36xf32, #tpu.memory_space<vmem>>, vector<15x16x4xf32>
    tpu.vector_store %arg7[%c1_17, %c0_18, %c4], %11 {strides = array<i32>} : memref<16x16x36xf32, #tpu.memory_space<vmem>>, vector<15x16x4xf32>,
    %13 = vector.extract_strided_slice %2 {offsets = [0, 1, 0], sizes = [15, 15, 4], strides = [1, 1, 1]} : vector<16x16x4xf32> to vector<15x15x4xf32>
    %c1_19 = arith.constant 1 : index
    %c0_20 = arith.constant 0 : index
    %c8 = arith.constant 8 : index
    %14 = vector.load %arg7[%c1_19, %c0_20, %c8] : memref<16x16x36xf32, #tpu.memory_space<vmem>>, vector<15x15x4xf32>
    tpu.vector_store %arg7[%c1_19, %c0_20, %c8], %13 {strides = array<i32>} : memref<16x16x36xf32, #tpu.memory_space<vmem>>, vector<15x15x4xf32>,
    %15 = vector.extract_strided_slice %2 {offsets = [0, 0, 0], sizes = [16, 15, 4], strides = [1, 1, 1]} : vector<16x16x4xf32> to vector<16x15x4xf32>
    %c0_21 = arith.constant 0 : index
    %c1_22 = arith.constant 1 : index
    %c12 = arith.constant 12 : index
    %16 = vector.load %arg7[%c0_21, %c1_22, %c12] : memref<16x16x36xf32, #tpu.memory_space<vmem>>, vector<16x15x4xf32>
    tpu.vector_store %arg7[%c0_21, %c1_22, %c12], %15 {strides = array<i32>} : memref<16x16x36xf32, #tpu.memory_space<vmem>>, vector<16x15x4xf32>,
    %c0_23 = arith.constant 0 : index
    %c0_24 = arith.constant 0 : index
    %c16 = arith.constant 16 : index
    %17 = vector.load %arg7[%c0_23, %c0_24, %c16] : memref<16x16x36xf32, #tpu.memory_space<vmem>>, vector<16x16x4xf32>
    tpu.vector_store %arg7[%c0_23, %c0_24, %c16], %2 {strides = array<i32>} : memref<16x16x36xf32, #tpu.memory_space<vmem>>, vector<16x16x4xf32>,
    %18 = vector.extract_strided_slice %2 {offsets = [0, 1, 0], sizes = [16, 15, 4], strides = [1, 1, 1]} : vector<16x16x4xf32> to vector<16x15x4xf32>
    %c0_25 = arith.constant 0 : index
    %c0_26 = arith.constant 0 : index
    %c20 = arith.constant 20 : index
    %19 = vector.load %arg7[%c0_25, %c0_26, %c20] : memref<16x16x36xf32, #tpu.memory_space<vmem>>, vector<16x15x4xf32>
    tpu.vector_store %arg7[%c0_25, %c0_26, %c20], %18 {strides = array<i32>} : memref<16x16x36xf32, #tpu.memory_space<vmem>>, vector<16x15x4xf32>,
    %20 = vector.extract_strided_slice %2 {offsets = [1, 0, 0], sizes = [15, 15, 4], strides = [1, 1, 1]} : vector<16x16x4xf32> to vector<15x15x4xf32>
    %c0_27 = arith.constant 0 : index
    %c1_28 = arith.constant 1 : index
    %c24 = arith.constant 24 : index
    %21 = vector.load %arg7[%c0_27, %c1_28, %c24] : memref<16x16x36xf32, #tpu.memory_space<vmem>>, vector<15x15x4xf32>
    tpu.vector_store %arg7[%c0_27, %c1_28, %c24], %20 {strides = array<i32>} : memref<16x16x36xf32, #tpu.memory_space<vmem>>, vector<15x15x4xf32>,
    %22 = vector.extract_strided_slice %2 {offsets = [1, 0, 0], sizes = [15, 16, 4], strides = [1, 1, 1]} : vector<16x16x4xf32> to vector<15x16x4xf32>
    %c0_29 = arith.constant 0 : index
    %c0_30 = arith.constant 0 : index
    %c28 = arith.constant 28 : index
    %23 = vector.load %arg7[%c0_29, %c0_30, %c28] : memref<16x16x36xf32, #tpu.memory_space<vmem>>, vector<15x16x4xf32>
    tpu.vector_store %arg7[%c0_29, %c0_30, %c28], %22 {strides = array<i32>} : memref<16x16x36xf32, #tpu.memory_space<vmem>>, vector<15x16x4xf32>,
    %24 = vector.extract_strided_slice %2 {offsets = [1, 1, 0], sizes = [15, 15, 4], strides = [1, 1, 1]} : vector<16x16x4xf32> to vector<15x15x4xf32>
    %c0_31 = arith.constant 0 : index
    %c0_32 = arith.constant 0 : index
    %c32 = arith.constant 32 : index
    %25 = vector.load %arg7[%c0_31, %c0_32, %c32] : memref<16x16x36xf32, #tpu.memory_space<vmem>>, vector<15x15x4xf32>
    tpu.vector_store %arg7[%c0_31, %c0_32, %c32], %24 {strides = array<i32>} : memref<16x16x36xf32, #tpu.memory_space<vmem>>, vector<15x15x4xf32>,
    %c0_33 = arith.constant 0 : index
    %c0_34 = arith.constant 0 : index
    %c0_35 = arith.constant 0 : index
    %26 = vector.load %arg7[%c0_33, %c0_34, %c0_35] : memref<16x16x36xf32, #tpu.memory_space<vmem>>, vector<16x16x36xf32>
    %27 = vector.shape_cast %26 : vector<16x16x36xf32> to vector<256x36xf32>
    %28 = arith.truncf %27 : vector<256x36xf32> to vector<256x36xbf16>
    %c0_36 = arith.constant 0 : index
    %c0_37 = arith.constant 0 : index
    %29 = vector.load %arg2[%c0_36, %c0_37] : memref<36x8xbf16, #tpu.memory_space<vmem>>, vector<36x8xbf16>
    %cst_38 = arith.constant dense<0.000000e+00> : vector<256x8xf32>
    %30 = tpu.matmul %28, %29, %cst_38 {dimension_numbers = #tpu.dot_dimension_numbers<[1], [0], [0], [1], [0, 0, 1, 1], [], []>} : vector<256x36xbf16>, vector<36x8xbf16>, vector<256x8xf32> -> vector<256x8xf32>
    %c0_39 = arith.constant 0 : index
    %c0_40 = arith.constant 0 : index
    %31 = vector.load %arg3[%c0_39, %c0_40] : memref<1x8xf32, #tpu.memory_space<vmem>>, vector<1x8xf32>
    %32 = vector.broadcast %31 : vector<1x8xf32> to vector<256x8xf32>
    %33 = arith.addf %30, %32 : vector<256x8xf32>
    %cst_41 = arith.constant 0.000000e+00 : f32
    %34 = vector.broadcast %cst_41 : f32 to vector<256x8xf32>
    %35 = arith.cmpf ogt, %33, %34 : vector<256x8xf32>
    %cst_42 = arith.constant 1.000000e-01 : f32
    %36 = vector.broadcast %cst_42 : f32 to vector<256x8xf32>
    %37 = arith.mulf %36, %33 : vector<256x8xf32>
    %38 = arith.select %35, %33, %37 : vector<256x8xi1>, vector<256x8xf32>
    %39 = arith.truncf %38 : vector<256x8xf32> to vector<256x8xbf16>
    %c0_43 = arith.constant 0 : index
    %c0_44 = arith.constant 0 : index
    %40 = vector.load %arg4[%c0_43, %c0_44] : memref<8x21xbf16, #tpu.memory_space<vmem>>, vector<8x21xbf16>
    %cst_45 = arith.constant dense<0.000000e+00> : vector<256x21xf32>
    %41 = tpu.matmul %39, %40, %cst_45 {dimension_numbers = #tpu.dot_dimension_numbers<[1], [0], [0], [1], [0, 0, 1, 1], [], []>} : vector<256x8xbf16>, vector<8x21xbf16>, vector<256x21xf32> -> vector<256x21xf32>
    %c0_46 = arith.constant 0 : index
    %c0_47 = arith.constant 0 : index
    %42 = vector.load %arg5[%c0_46, %c0_47] : memref<1x21xf32, #tpu.memory_space<vmem>>, vector<1x21xf32>
    %43 = vector.broadcast %42 : vector<1x21xf32> to vector<256x21xf32>
    %44 = arith.addf %41, %43 : vector<256x21xf32>
    %45 = vector.shape_cast %44 : vector<256x21xf32> to vector<16x16x21xf32>
    %c0_48 = arith.constant 0 : index
    %c0_49 = arith.constant 0 : index
    %c0_50 = arith.constant 0 : index
    %c0_51 = arith.constant 0 : index
    %46 = vector.load %arg6[%c0_48, %c0_49, %c0_50, %c0_51] : memref<1x16x16x21xf32, #tpu.memory_space<vmem>>, vector<1x16x16x21xf32>
    %47 = vector.shape_cast %46 : vector<1x16x16x21xf32> to vector<16x16x21xf32>
    %48 = vector.shape_cast %45 : vector<16x16x21xf32> to vector<1x16x16x21xf32>
    tpu.vector_store %arg6[%c0_48, %c0_49, %c0_50, %c0_51], %48 {strides = array<i32>} : memref<1x16x16x21xf32, #tpu.memory_space<vmem>>, vector<1x16x16x21xf32>,
    return
  }
  func.func @transform_0(%arg0: i32) -> (i32, i32, i32, i32) {
    %c0_i32 = arith.constant 0 : i32
    %c0_i32_0 = arith.constant 0 : i32
    %c0_i32_1 = arith.constant 0 : i32
    %c0_i32_2 = arith.constant 0 : i32
    return %arg0, %c0_i32, %c0_i32_0, %c0_i32_1 : i32, i32, i32, i32
  }
  func.func @transform_1(%arg0: i32) -> (i32, i32) {
    %c0_i32 = arith.constant 0 : i32
    %c0_i32_0 = arith.constant 0 : i32
    %c0_i32_1 = arith.constant 0 : i32
    return %c0_i32, %c0_i32_0 : i32, i32
  }
  func.func @transform_2(%arg0: i32) -> (i32, i32) {
    %c0_i32 = arith.constant 0 : i32
    %c0_i32_0 = arith.constant 0 : i32
    %c0_i32_1 = arith.constant 0 : i32
    return %c0_i32, %c0_i32_0 : i32, i32
  }
  func.func @transform_3(%arg0: i32) -> (i32, i32) {
    %c0_i32 = arith.constant 0 : i32
    %c0_i32_0 = arith.constant 0 : i32
    %c0_i32_1 = arith.constant 0 : i32
    return %c0_i32, %c0_i32_0 : i32, i32
  }
  func.func @transform_4(%arg0: i32) -> (i32, i32) {
    %c0_i32 = arith.constant 0 : i32
    %c0_i32_0 = arith.constant 0 : i32
    %c0_i32_1 = arith.constant 0 : i32
    return %c0_i32, %c0_i32_0 : i32, i32
  }
  func.func @transform_5(%arg0: i32) -> (i32, i32, i32, i32) {
    %c0_i32 = arith.constant 0 : i32
    %c0_i32_0 = arith.constant 0 : i32
    %c0_i32_1 = arith.constant 0 : i32
    %c0_i32_2 = arith.constant 0 : i32
    return %arg0, %c0_i32, %c0_i32_0, %c0_i32_1 : i32, i32, i32, i32
  }
}

</mosaic_0001>

<bundles_post_ra>
// kernel: scale_prediction.1
= control target key start
LH: loop header
LB: loop body
LE: loop exit
PB: predicated region body
PF: predicated region fallthrough
CT: control target
= control target key end

     0   :  { %s3022_s18 = smov 0   ;;  %s3830_s0 = inlined_call_operand.vmem [shape: bf16[2,16,16,4], index: 0, kind: input, shape index: {}]   ;;  %s3831_s1 = inlined_call_operand.vmem [shape: bf16[36,8], index: 1, kind: input, shape index: {}]   ;;  %s3832_s2 = inlined_call_operand.vmem [shape: f32[1,8], index: 2, kind: input, shape index: {}]   ;;  %s3833_s3 = inlined_call_operand.vmem [shape: bf16[8,21], index: 3, kind: input, shape index: {}]   ;;  %s3834_s4 = inlined_call_operand.vmem [shape: f32[1,21], index: 4, kind: input, shape index: {}]   ;;  %s3835_s5 = inlined_call_operand.vmem [shape: f32[2,16,16,21], index: 5, kind: output, shape index: {}]  }
   0x1 LB: > { %s2101_s19 = sadd.s32 4294967295, %s2981_s18   ;;  %p2105_p0 = scmp.ge.s32.totalorder %s2981_s18, 1  ;;  %s2981_s18 = sphi %s3022_s18, %s15_s18  }
   0x2   : > { %p187_p1 = scmp.lt.s32.totalorder %s2981_s18, 3 }
   0x4   : > { %p188_p2 = pnand %p2105_p0, %p187_p1 }
   0x5   : > { %p3032_p3 = scmp.lt.s32.totalorder (!%p188_p2), %s2101_s19, 1  ;;  %vm290_vm0 = vcmask (!%p188_p2), 293888   ;;  %vm296_vm1 = vcmask (!%p188_p2), 286720   ;;  %v2983_v0 = vmov (!%p188_p2), 0.0   ;;  %vm330_vm2 = vcmask (!%p188_p2), 31744   ;;  %s2984_s25 = smov (!%p188_p2), 12  }
   0x6   : > { %191 = sbr.rel (%p188_p2) target bundleno = 834 (0x342), region = 40  ;;  %291 = vst.msk [vmem:[#allocation2] sm:$0xff] (!%p188_p2), %vm290_vm0, %v2983_v0  ;;  %292 = vst.msk [vmem:[#allocation2 + $0x8] sm:$0xff] (!%p188_p2), %vm290_vm0, %v2983_v0  ;;  %vm332_vm3 = vcmask (!%p188_p2), 30720   ;;  %s2985_s26 = smov (!%p188_p2), 4   ;;  %v2972_v35 = vld [vmem:[%s3831_s1] sm:$0xff] (!%p188_p2)  }
   0x7   : > { %294 = vst.msk [vmem:[#allocation2 + $0xf0] sm:$0xff] (!%p188_p2), %vm290_vm0, %v2983_v0  ;;  %295 = vst.msk [vmem:[#allocation2 + $0xf8] sm:$0xff] (!%p188_p2), %vm290_vm0, %v2983_v0  ;;  %s2986_s27 = smov (!%p188_p2), 8   ;;  %s2987_s28 = smov (!%p188_p2), 16   ;;  %2266 = vmatprep.subr.bf16.mxu0 (!%p188_p2), %v2972_v35  ;;  %v2973_v40 = vld [vmem:[%s3831_s1 + $0x8] sm:$0xff] (!%p188_p2)   ;;  %vm1514_vm4 = vcmask (!%p188_p2), 1041408  }
   0x8   : > { %298 = vst.msk [vmem:[#allocation2 + $0x10] sm:$0x1] (!%p188_p2), %vm296_vm1, %v2983_v0  ;;  %299 = vst.msk [vmem:[#allocation2 + $0x20] sm:$0x1] (!%p188_p2), %vm296_vm1, %v2983_v0  ;;  %s2988_s29 = smov (!%p188_p2), 20   ;;  %s2989_s7 = smov (!%p188_p2), 24   ;;  %2267 = vmatpush3.bf16.msra.mxu0 (!%p188_p2), %v2972_v35 }
   0x9   : > { %300 = vst.msk [vmem:[#allocation2 + $0x30] sm:$0x1] (!%p188_p2), %vm296_vm1, %v2983_v0  ;;  %301 = vst.msk [vmem:[#allocation2 + $0x40] sm:$0x1] (!%p188_p2), %vm296_vm1, %v2983_v0  ;;  %2268 = vmatprep.subr.bf16.mxu0 (!%p188_p2), %v2973_v40  ;;  %s2990_s10 = smov (!%p188_p2), 28   ;;  %s2991_s13 = smov (!%p188_p2), 32  }
   0xa   : > { %302 = vst.msk [vmem:[#allocation2 + $0x50] sm:$0x1] (!%p188_p2), %vm296_vm1, %v2983_v0  ;;  %303 = vst.msk [vmem:[#allocation2 + $0x60] sm:$0x1] (!%p188_p2), %vm296_vm1, %v2983_v0  ;;  %vm733_vm5 = vcmask (!%p188_p2), 130144   ;;  %vm735_vm6 = vcmask (!%p188_p2), 129120  }
   0xb   : > { %304 = vst.msk [vmem:[#allocation2 + $0x70] sm:$0x1] (!%p188_p2), %vm296_vm1, %v2983_v0  ;;  %305 = vst.msk [vmem:[#allocation2 + $0x80] sm:$0x1] (!%p188_p2), %vm296_vm1, %v2983_v0  ;;  %vm482_vm7 = vcmask (!%p188_p2), 64544   ;;  %vm603_vm8 = vcmask (!%p188_p2), 97345  }
   0xc   : > { %306 = vst.msk [vmem:[#allocation2 + $0x90] sm:$0x1] (!%p188_p2), %vm296_vm1, %v2983_v0  ;;  %307 = vst.msk [vmem:[#allocation2 + $0xa0] sm:$0x1] (!%p188_p2), %vm296_vm1, %v2983_v0  ;;  %2269 = vmatpush3.bf16.msra.mxu0 (!%p188_p2), %v2973_v40  ;;  %vm605_vm9 = vcmask (!%p188_p2), 97344   ;;  %vm863_vm10 = vcmask (!%p188_p2), 162944  }
   0xd   : > { %308 = vst.msk [vmem:[#allocation2 + $0xb0] sm:$0x1] %vm296_vm1, %v2983_v0  ;;  %309 = vst.msk [vmem:[#allocation2 + $0xc0] sm:$0x1] %vm296_vm1, %v2983_v0  ;;  %s3838_s19 = smov (!%p3032_p3, %s2101_s19), 1  ;;  %vm992_vm11 = vcmask 195745  }
   0xe   : > { %310 = vst.msk [vmem:[#allocation2 + $0xd0] sm:$0x1] %vm296_vm1, %v2983_v0  ;;  %311 = vst.msk [vmem:[#allocation2 + $0xe0] sm:$0x1] %vm296_vm1, %v2983_v0  ;;  %s2149_s21 = sshll.u32 %s3838_s19, 7  ;;  %vm994_vm12 = vcmask 195744  }
   0xf   : > { %314 = vst.msk [vmem:[#allocation2 + $0x1f] sm:$0x1] %vm296_vm1, %v2983_v0  ;;  %315 = vst.msk [vmem:[#allocation2 + $0x2f] sm:$0x1] %vm296_vm1, %v2983_v0  ;;  %s3082_s24 = scalar_lea.vmem %s3830_s0, %s2149_s21  ;;  %vm1116_vm13 = vcmask 228544   ;;  %vm1118_vm14 = vcmask 227520  }
  0x10   : > { %316 = vst.msk [vmem:[#allocation2 + $0x3f] sm:$0x1] %vm296_vm1, %v2983_v0  ;;  %317 = vst.msk [vmem:[#allocation2 + $0x4f] sm:$0x1] %vm296_vm1, %v2983_v0  ;;  %v2152_v1 = vld [vmem:[%s3082_s24] sm:$0xff]   ;;  %v2215_v2 = vld [vmem:[%s3082_s24 + $0x8] sm:$0xff]  }
  0x11   : > { %318 = vst.msk [vmem:[#allocation2 + $0x5f] sm:$0x1] %vm296_vm1, %v2983_v0  ;;  %319 = vst.msk [vmem:[#allocation2 + $0x6f] sm:$0x1] %vm296_vm1, %v2983_v0  ;;  %v2216_v3 = vld [vmem:[%s3082_s24 + $0x10] sm:$0xff]   ;;  %v2153_v4 = vunpack.c.l.bf16 %v2152_v1  ;;  %v2154_v5 = vunpack.c.h.bf16 %v2152_v1  ;;  %v2157_v6 = vunpack.c.l.bf16 %v2215_v2  ;;  %v2158_v7 = vunpack.c.h.bf16 %v2215_v2  ;;  %v2217_v8 = vld [vmem:[%s3082_s24 + $0x18] sm:$0xff]  }
  0x12   : > { %320 = vst.msk [vmem:[#allocation2 + $0x7f] sm:$0x1] %vm296_vm1, %v2983_v0  ;;  %321 = vst.msk [vmem:[#allocation2 + $0x8f] sm:$0x1] %vm296_vm1, %v2983_v0  ;;  %v2161_v9 = vunpack.c.l.bf16 %v2216_v3  ;;  %v2162_v10 = vunpack.c.h.bf16 %v2216_v3  ;;  %v2165_v11 = vunpack.c.l.bf16 %v2217_v8  ;;  %v2166_v12 = vunpack.c.h.bf16 %v2217_v8  ;;  %v2218_v13 = vld [vmem:[%s3082_s24 + $0x20] sm:$0xff]   ;;  %v2219_v17 = vld [vmem:[%s3082_s24 + $0x28] sm:$0xff]  }
  0x13   : > { %322 = vst.msk [vmem:[#allocation2 + $0x9f] sm:$0x1] %vm296_vm1, %v2983_v0  ;;  %323 = vst.msk [vmem:[#allocation2 + $0xaf] sm:$0x1] %vm296_vm1, %v2983_v0  ;;  %v2367_v14 = vpack.i.bf16 %v2154_v5, %v2153_v4  ;;  %v3099_v15 = vpack.i.bf16 %v2158_v7, %v2157_v6  ;;  %v2169_v16 = vunpack.c.l.bf16 %v2218_v13  ;;  %v2170_v18 = vunpack.c.h.bf16 %v2218_v13  ;;  %v2220_v21 = vld [vmem:[%s3082_s24 + $0x30] sm:$0xff]   ;;  %v2221_v22 = vld [vmem:[%s3082_s24 + $0x38] sm:$0xff]  }
  0x14   : > { %324 = vst.msk [vmem:[#allocation2 + $0xbf] sm:$0x1] %vm296_vm1, %v2983_v0  ;;  %325 = vst.msk [vmem:[#allocation2 + $0xcf] sm:$0x1] %vm296_vm1, %v2983_v0  ;;  %v3106_v19 = vpack.i.bf16 %v2166_v12, %v2165_v11  ;;  %v2173_v20 = vunpack.c.l.bf16 %v2219_v17  ;;  %v3111_v23 = vpack.i.bf16 %v2162_v10, %v2161_v9  ;;  %v2174_v24 = vunpack.c.h.bf16 %v2219_v17  ;;  %v2222_v31 = vld [vmem:[%s3082_s24 + $0x40] sm:$0xff]   ;;  %v2223_v38 = vld [vmem:[%s3082_s24 + $0x48] sm:$0xff]  }
  0x15   : > { %326 = vst.msk [vmem:[#allocation2 + $0xdf] sm:$0x1] %vm296_vm1, %v2983_v0  ;;  %327 = vst.msk [vmem:[#allocation2 + $0xef] sm:$0x1] %vm296_vm1, %v2983_v0  ;;  %2368 = vrot.lane.b32.xlu1 %v2367_v14, %s2984_s25  ;;  %2358 = vrot.lane.b32.xlu0 %v2367_v14, %s2985_s26  ;;  %v3113_v25 = vpack.i.bf16 %v2170_v18, %v2169_v16  ;;  %v2177_v26 = vunpack.c.l.bf16 %v2220_v21  ;;  %v2178_v27 = vunpack.c.h.bf16 %v2220_v21  ;;  %v2181_v28 = vunpack.c.l.bf16 %v2221_v22  ;;  %v2224_v39 = vld [vmem:[%s3082_s24 + $0x50] sm:$0xff]   ;;  %v2225_v49 = vld [vmem:[%s3082_s24 + $0x58] sm:$0xff]  }
  0x16   : > { %313 = vst.msk [vmem:[#allocation2 + $0xf] sm:$0x1] %vm296_vm1, %v2983_v0  ;;  %297 = vst.msk [vmem:[#allocation2] sm:$0x1] %vm296_vm1, %v2983_v0  ;;  %v3119_v29 = vpack.i.bf16 %v2174_v24, %v2173_v20  ;;  %v2182_v32 = vunpack.c.h.bf16 %v2221_v22  ;;  %v2185_v33 = vunpack.c.l.bf16 %v2222_v31  ;;  %v2186_v34 = vunpack.c.h.bf16 %v2222_v31  ;;  %v2226_v53 = vld [vmem:[%s3082_s24 + $0x60] sm:$0xff]   ;;  %v2227_v57 = vld [vmem:[%s3082_s24 + $0x68] sm:$0xff]  }
  0x17   : > { %312 = vst.msk [vmem:[#allocation2 + $0xf0] sm:$0x1] %vm296_vm1, %v2983_v0  ;;  %328 = vst.msk [vmem:[#allocation2 + $0xff] sm:$0x1] %vm296_vm1, %v2983_v0  ;;  %v3122_v30 = vpack.i.bf16 %v2178_v27, %v2177_v26  ;;  %v2189_v41 = vunpack.c.l.bf16 %v2223_v38  ;;  %v2190_v42 = vunpack.c.h.bf16 %v2223_v38  ;;  %v2193_v44 = vunpack.c.l.bf16 %v2224_v39  ;;  %v2228_v61 = vld [vmem:[%s3082_s24 + $0x70] sm:$0xff]   ;;  %s2150_s20 = sshll.u32 %s3838_s19, 8 }
  0x18   : > { %333 = vst.msk [vmem:[#allocation2 + $0x19] sm:$0x7f] %vm332_vm3, %v2154_v5  ;;  %335 = vst.msk [vmem:[#allocation2 + $0x29] sm:$0x7f] %vm332_vm3, %v2158_v7  ;;  %v3134_v36 = vpack.i.bf16 %v2182_v32, %v2181_v28  ;;  %v3137_v37 = vpack.i.bf16 %v2186_v34, %v2185_v33  ;;  %v2194_v45 = vunpack.c.h.bf16 %v2224_v39  ;;  %v2197_v50 = vunpack.c.l.bf16 %v2225_v49 }
  0x19   : > { %331 = vst.msk [vmem:[#allocation2 + $0x11] sm:$0xff] %vm330_vm2, %v2153_v4  ;;  %334 = vst.msk [vmem:[#allocation2 + $0x21] sm:$0xff] %vm330_vm2, %v2157_v6  ;;  %2373 = vrot.lane.b32.xlu1 %v3099_v15, %s2984_s25  ;;  %2363 = vrot.lane.b32.xlu0 %v2367_v14, %s2986_s27  ;;  %v3154_v43 = vpack.i.bf16 %v2190_v42, %v2189_v41  ;;  %v2974_v46 = vld [vmem:[%s3831_s1 + $0x10] ss:$0 sps:$4 sm:$0x33]   ;;  %v2198_v51 = vunpack.c.h.bf16 %v2225_v49  ;;  %v2201_v54 = vunpack.c.l.bf16 %v2226_v53  ;;  %v2202_v55 = vunpack.c.h.bf16 %v2226_v53 }
  0x1a   : > { %336 = vst.msk [vmem:[#allocation2 + $0x31] sm:$0xff] %vm330_vm2, %v2161_v9  ;;  %338 = vst.msk [vmem:[#allocation2 + $0x41] sm:$0xff] %vm330_vm2, %v2165_v11  ;;  %v3162_v47 = vpack.i.bf16 %v2194_v45, %v2193_v44  ;;  %2338 = vmatprep.subr.msk.bf16.mxu0 %vm1514_vm4, %v2974_v46  ;;  %v1516_v48 = vsel %vm1514_vm4, %v2974_v46, 0  ;;  %v2205_v58 = vunpack.c.l.bf16 %v2227_v57  ;;  %v2206_v59 = vunpack.c.h.bf16 %v2227_v57 }
  0x1b   : > { %337 = vst.msk [vmem:[#allocation2 + $0x39] sm:$0x7f] %vm332_vm3, %v2162_v10  ;;  %339 = vst.msk [vmem:[#allocation2 + $0x49] sm:$0x7f] %vm332_vm3, %v2166_v12  ;;  %2271 = vmatpush3.bf16.msra.mxu0 %v1516_v48  ;;  %v3178_v52 = vpack.i.bf16 %v2198_v51, %v2197_v50  ;;  %v3195_v56 = vpack.i.bf16 %v2202_v55, %v2201_v54  ;;  %v2209_v62 = vunpack.c.l.bf16 %v2228_v61  ;;  %v2210_v63 = vunpack.c.h.bf16 %v2228_v61 }
  0x1c   : > { %340 = vst.msk [vmem:[#allocation2 + $0x51] sm:$0xff] %vm330_vm2, %v2169_v16  ;;  %342 = vst.msk [vmem:[#allocation2 + $0x61] sm:$0xff] %vm330_vm2, %v2173_v20  ;;  %v3220_v60 = vpack.i.bf16 %v2206_v59, %v2205_v58  ;;  %vm1238_vm15 = vcmask 261344   ;;  %vm1359_vm1 = vcmask 294145  }
  0x1d   : > { %341 = vst.msk [vmem:[#allocation2 + $0x59] sm:$0x7f] %vm332_vm3, %v2170_v18  ;;  %2383 = vrot.lane.b32.xlu1 %v3099_v15, %s2987_s28  ;;  %2378 = vrot.lane.b32.xlu0 %v2367_v14, %s2987_s28  ;;  %343 = vst.msk [vmem:[#allocation2 + $0x69] sm:$0x7f] %vm332_vm3, %v2174_v24  ;;  %v3237_v0 = vpack.i.bf16 %v2210_v63, %v2209_v62 }
  0x1e   : > { %344 = vst.msk [vmem:[#allocation2 + $0x71] sm:$0xff] %vm330_vm2, %v2177_v26  ;;  %346 = vst.msk [vmem:[#allocation2 + $0x81] sm:$0xff] %vm330_vm2, %v2181_v28 }
  0x1f   : > { %345 = vst.msk [vmem:[#allocation2 + $0x79] sm:$0x7f] %vm332_vm3, %v2178_v27  ;;  %347 = vst.msk [vmem:[#allocation2 + $0x89] sm:$0x7f] %vm332_vm3, %v2182_v32 }
  0x20   : > { %348 = vst.msk [vmem:[#allocation2 + $0x91] sm:$0xff] %vm330_vm2, %v2185_v33  ;;  %350 = vst.msk [vmem:[#allocation2 + $0xa1] sm:$0xff] %vm330_vm2, %v2189_v41 }
  0x21   : > { %2393 = vrot.lane.b32.xlu1 %v3099_v15, %s2988_s29  ;;  %2388 = vrot.lane.b32.xlu0 %v2367_v14, %s2988_s29  ;;  %349 = vst.msk [vmem:[#allocation2 + $0x99] sm:$0x7f] %vm332_vm3, %v2186_v34  ;;  %351 = vst.msk [vmem:[#allocation2 + $0xa9] sm:$0x7f] %vm332_vm3, %v2190_v42 }
  0x22   : > { %352 = vst.msk [vmem:[#allocation2 + $0xb1] sm:$0xff] %vm330_vm2, %v2193_v44  ;;  %354 = vst.msk [vmem:[#allocation2 + $0xc1] sm:$0xff] %vm330_vm2, %v2197_v50 }
  0x23   : > { %353 = vst.msk [vmem:[#allocation2 + $0xb9] sm:$0x7f] %vm332_vm3, %v2194_v45  ;;  %355 = vst.msk [vmem:[#allocation2 + $0xc9] sm:$0x7f] %vm332_vm3, %v2198_v51 }
  0x24   : > { %356 = vst.msk [vmem:[#allocation2 + $0xd1] sm:$0xff] %vm330_vm2, %v2201_v54  ;;  %358 = vst.msk [vmem:[#allocation2 + $0xe1] sm:$0xff] %vm330_vm2, %v2205_v58 }
  0x25   : > { %2403 = vrot.lane.b32.xlu1 %v3111_v23, %s2989_s7  ;;  %2398 = vrot.lane.b32.xlu0 %v3099_v15, %s2989_s7  ;;  %357 = vst.msk [vmem:[#allocation2 + $0xd9] sm:$0x7f] %vm332_vm3, %v2202_v55  ;;  %359 = vst.msk [vmem:[#allocation2 + $0xe9] sm:$0x7f] %vm332_vm3, %v2206_v59 }
  0x26   : > { %360 = vst.msk [vmem:[#allocation2 + $0xf1] sm:$0xff] %vm330_vm2, %v2209_v62  ;;  %vm1361_vm2 = vcmask 294144  }
  0x27   : > { %361 = vst.msk [vmem:[#allocation2 + $0xf9] sm:$0x7f] %vm332_vm3, %v2210_v63  ;;  %vm1848_vm3 = vcmask 1043456  }
  0x29   : > { %2413 = vrot.lane.b32.xlu1 %v3111_v23, %s2990_s10  ;;  %2408 = vrot.lane.b32.xlu0 %v3099_v15, %s2990_s10 }
  0x2d   : > { %2423 = vrot.lane.b32.xlu1 %v3099_v15, %s2985_s26  ;;  %2418 = vrot.lane.b32.xlu0 %v3099_v15, %s2991_s13 }
  0x31   : > { %2433 = vrot.lane.b32.xlu1 %v3111_v23, %s2985_s26  ;;  %2428 = vrot.lane.b32.xlu0 %v3111_v23, %s2991_s13 }
  0x35   : > { %2443 = vrot.lane.b32.xlu1 %v3111_v23, %s2986_s27  ;;  %2438 = vrot.lane.b32.xlu0 %v3099_v15, %s2986_s27 }
  0x39   : > { %2453 = vrot.lane.b32.xlu1 %v3106_v19, %s2984_s25  ;;  %2448 = vrot.lane.b32.xlu0 %v3111_v23, %s2984_s25 }
  0x3d   : > { %2463 = vrot.lane.b32.xlu1 %v3106_v19, %s2987_s28  ;;  %2458 = vrot.lane.b32.xlu0 %v3111_v23, %s2987_s28 }
  0x41   : > { %2473 = vrot.lane.b32.xlu1 %v3106_v19, %s2988_s29  ;;  %2468 = vrot.lane.b32.xlu0 %v3111_v23, %s2988_s29 }
  0x45   : > { %2483 = vrot.lane.b32.xlu1 %v3113_v25, %s2989_s7  ;;  %2478 = vrot.lane.b32.xlu0 %v3106_v19, %s2989_s7 }
  0x49   : > { %2493 = vrot.lane.b32.xlu1 %v3113_v25, %s2990_s10  ;;  %2488 = vrot.lane.b32.xlu0 %v3106_v19, %s2990_s10 }
  0x4d   : > { %2503 = vrot.lane.b32.xlu1 %v3106_v19, %s2985_s26  ;;  %2498 = vrot.lane.b32.xlu0 %v3106_v19, %s2991_s13 }
  0x51   : > { %2513 = vrot.lane.b32.xlu1 %v3113_v25, %s2985_s26  ;;  %2508 = vrot.lane.b32.xlu0 %v3113_v25, %s2991_s13 }
  0x55   : > { %2523 = vrot.lane.b32.xlu1 %v3113_v25, %s2986_s27  ;;  %2518 = vrot.lane.b32.xlu0 %v3106_v19, %s2986_s27 }
  0x59   : > { %2533 = vrot.lane.b32.xlu1 %v3119_v29, %s2984_s25  ;;  %2528 = vrot.lane.b32.xlu0 %v3113_v25, %s2984_s25 }
  0x5d   : > { %2543 = vrot.lane.b32.xlu1 %v3119_v29, %s2987_s28  ;;  %2538 = vrot.lane.b32.xlu0 %v3113_v25, %s2987_s28 }
  0x61   : > { %2553 = vrot.lane.b32.xlu1 %v3119_v29, %s2988_s29  ;;  %2548 = vrot.lane.b32.xlu0 %v3113_v25, %s2988_s29 }
  0x65   : > { %2563 = vrot.lane.b32.xlu1 %v3122_v30, %s2989_s7  ;;  %2558 = vrot.lane.b32.xlu0 %v3119_v29, %s2989_s7 }
  0x69   : > { %2573 = vrot.lane.b32.xlu1 %v3122_v30, %s2990_s10  ;;  %2568 = vrot.lane.b32.xlu0 %v3119_v29, %s2990_s10 }
  0x6d   : > { %2583 = vrot.lane.b32.xlu1 %v3119_v29, %s2985_s26  ;;  %2578 = vrot.lane.b32.xlu0 %v3119_v29, %s2991_s13 }
  0x71   : > { %2593 = vrot.lane.b32.xlu1 %v3122_v30, %s2985_s26  ;;  %2588 = vrot.lane.b32.xlu0 %v3122_v30, %s2991_s13 }
  0x75   : > { %2603 = vrot.lane.b32.xlu1 %v3122_v30, %s2986_s27  ;;  %2598 = vrot.lane.b32.xlu0 %v3119_v29, %s2986_s27 }
  0x79   : > { %2613 = vrot.lane.b32.xlu1 %v3134_v36, %s2984_s25  ;;  %2608 = vrot.lane.b32.xlu0 %v3122_v30, %s2984_s25 }
  0x7d   : > { %2623 = vrot.lane.b32.xlu1 %v3134_v36, %s2987_s28  ;;  %2618 = vrot.lane.b32.xlu0 %v3122_v30, %s2987_s28 }
  0x81   : > { %2633 = vrot.lane.b32.xlu1 %v3134_v36, %s2988_s29  ;;  %2628 = vrot.lane.b32.xlu0 %v3122_v30, %s2988_s29 }
  0x85   : > { %2643 = vrot.lane.b32.xlu1 %v3137_v37, %s2989_s7  ;;  %2638 = vrot.lane.b32.xlu0 %v3134_v36, %s2989_s7 }
  0x87   : > { %v2369_v1 = vpop.permute.xlu1 %2368  ;;  %v2359_v2 = vpop.permute.xlu0 %2358 }
  0x88   : > { %v2371_v3 = vunpack.i.h.bf16 %v2369_v1  ;;  %v2370_v4 = vunpack.i.l.bf16 %v2369_v1  ;;  %v2361_v5 = vunpack.i.h.bf16 %v2359_v2  ;;  %v2360_v6 = vunpack.i.l.bf16 %v2359_v2 }
  0x89   : > { %2653 = vrot.lane.b32.xlu1 %v3137_v37, %s2990_s10  ;;  %2648 = vrot.lane.b32.xlu0 %v3134_v36, %s2990_s10 }
  0x8a   : > { %736 = vst.msk [vmem:[#allocation2 + $0x9] sm:$0x7f] %vm735_vm6, %v2371_v3 }
  0x8b   : > { %734 = vst.msk [vmem:[#allocation2 + $0x1] sm:$0xff] %vm733_vm5, %v2370_v4  ;;  %v2374_v7 = vpop.permute.xlu1 %2373  ;;  %v2364_v8 = vpop.permute.xlu0 %2363 }
  0x8c   : > { %484 = vst.msk [vmem:[#allocation2 + $0x18] sm:$0xff] %vm482_vm7, %v2361_v5  ;;  %483 = vst.msk [vmem:[#allocation2 + $0x10] sm:$0xff] %vm482_vm7, %v2360_v6  ;;  %v2376_v9 = vunpack.i.h.bf16 %v2374_v7  ;;  %v2375_v10 = vunpack.i.l.bf16 %v2374_v7  ;;  %v2366_v11 = vunpack.i.h.bf16 %v2364_v8  ;;  %v2365_v12 = vunpack.i.l.bf16 %v2364_v8 }
  0x8d   : > { %2663 = vrot.lane.b32.xlu1 %v3134_v36, %s2985_s26  ;;  %2658 = vrot.lane.b32.xlu0 %v3134_v36, %s2991_s13 }
  0x8e   : > { %604 = vst.msk [vmem:[#allocation2 + $0xf] sm:$0xfe] %vm603_vm8, %v2365_v12 }
  0x8f   : > { %606 = vst.msk [vmem:[#allocation2 + $0x17] sm:$0xff] %vm605_vm9, %v2366_v11  ;;  %v2384_v13 = vpop.permute.xlu1 %2383  ;;  %v2379_v14 = vpop.permute.xlu0 %2378 }
  0x90   : > { %737 = vst.msk [vmem:[#allocation2 + $0x11] sm:$0xff] %vm733_vm5, %v2375_v10  ;;  %v2386_v15 = vunpack.i.h.bf16 %v2384_v13  ;;  %v2385_v16 = vunpack.i.l.bf16 %v2384_v13  ;;  %v2381_v17 = vunpack.i.h.bf16 %v2379_v14  ;;  %v2380_v18 = vunpack.i.l.bf16 %v2379_v14 }
  0x91   : > { %738 = vst.msk [vmem:[#allocation2 + $0x19] sm:$0x7f] %vm735_vm6, %v2376_v9  ;;  %2673 = vrot.lane.b32.xlu1 %v3137_v37, %s2985_s26  ;;  %2668 = vrot.lane.b32.xlu0 %v3137_v37, %s2991_s13 }
  0x92   : > { %867 = vst.msk [vmem:[#allocation2 + $0x18] sm:$0xff] %vm863_vm10, %v2386_v15  ;;  %866 = vst.msk [vmem:[#allocation2 + $0x10] sm:$0xff] %vm863_vm10, %v2385_v16 }
  0x93   : > { %865 = vst.msk [vmem:[#allocation2 + $0x8] sm:$0xff] %vm863_vm10, %v2381_v17  ;;  %864 = vst.msk [vmem:[#allocation2] sm:$0xff] %vm863_vm10, %v2380_v18  ;;  %v2394_v19 = vpop.permute.xlu1 %2393  ;;  %v2389_v20 = vpop.permute.xlu0 %2388 }
  0x94   : > { %v2396_v21 = vunpack.i.h.bf16 %v2394_v19  ;;  %v2395_v22 = vunpack.i.l.bf16 %v2394_v19  ;;  %v2391_v23 = vunpack.i.h.bf16 %v2389_v20  ;;  %v2390_v24 = vunpack.i.l.bf16 %v2389_v20 }
  0x95   : > { %2683 = vrot.lane.b32.xlu1 %v3137_v37, %s2986_s27  ;;  %2678 = vrot.lane.b32.xlu0 %v3134_v36, %s2986_s27 }
  0x96   : > { %996 = vst.msk [vmem:[#allocation2 + $0xf] sm:$0xfe] %vm992_vm11, %v2395_v22  ;;  %993 = vst.msk [vmem:[#allocation2 - $0x1] sm:$0xfe] %vm992_vm11, %v2390_v24 }
  0x97   : > { %997 = vst.msk [vmem:[#allocation2 + $0x17] sm:$0xff] %vm994_vm12, %v2396_v21  ;;  %995 = vst.msk [vmem:[#allocation2 + $0x7] sm:$0xff] %vm994_vm12, %v2391_v23  ;;  %v2404_v25 = vpop.permute.xlu1 %2403  ;;  %v2399_v26 = vpop.permute.xlu0 %2398 }
  0x98   : > { %v2406_v27 = vunpack.i.h.bf16 %v2404_v25  ;;  %v2405_v28 = vunpack.i.l.bf16 %v2404_v25  ;;  %v2401_v29 = vunpack.i.h.bf16 %v2399_v26  ;;  %v2400_v30 = vunpack.i.l.bf16 %v2399_v26 }
  0x99   : > { %2693 = vrot.lane.b32.xlu1 %v3154_v43, %s2984_s25  ;;  %2688 = vrot.lane.b32.xlu0 %v3137_v37, %s2984_s25 }
  0x9a   : > { %1120 = vst.msk [vmem:[#allocation2 + $0x11] sm:$0xff] %vm1116_vm13, %v2405_v28  ;;  %1117 = vst.msk [vmem:[#allocation2 + $0x1] sm:$0xff] %vm1116_vm13, %v2400_v30 }
  0x9b   : > { %1121 = vst.msk [vmem:[#allocation2 + $0x19] sm:$0x7f] %vm1118_vm14, %v2406_v27  ;;  %1119 = vst.msk [vmem:[#allocation2 + $0x9] sm:$0x7f] %vm1118_vm14, %v2401_v29  ;;  %v2414_v31 = vpop.permute.xlu1 %2413  ;;  %v2409_v32 = vpop.permute.xlu0 %2408 }
  0x9c   : > { %v2416_v33 = vunpack.i.h.bf16 %v2414_v31  ;;  %v2415_v34 = vunpack.i.l.bf16 %v2414_v31  ;;  %v2411_v35 = vunpack.i.h.bf16 %v2409_v32  ;;  %v2410_v36 = vunpack.i.l.bf16 %v2409_v32 }
  0x9d   : > { %2703 = vrot.lane.b32.xlu1 %v3154_v43, %s2987_s28  ;;  %2698 = vrot.lane.b32.xlu0 %v3137_v37, %s2987_s28 }
  0x9e   : > { %1242 = vst.msk [vmem:[#allocation2 + $0x18] sm:$0xff] %vm1238_vm15, %v2416_v33  ;;  %1241 = vst.msk [vmem:[#allocation2 + $0x10] sm:$0xff] %vm1238_vm15, %v2415_v34 }
  0x9f   : > { %1240 = vst.msk [vmem:[#allocation2 + $0x8] sm:$0xff] %vm1238_vm15, %v2411_v35  ;;  %1239 = vst.msk [vmem:[#allocation2] sm:$0xff] %vm1238_vm15, %v2410_v36  ;;  %v2424_v38 = vpop.permute.xlu1 %2423  ;;  %v2419_v39 = vpop.permute.xlu0 %2418 }
  0xa0   : > { %v2426_v40 = vunpack.i.h.bf16 %v2424_v38  ;;  %v2425_v41 = vunpack.i.l.bf16 %v2424_v38  ;;  %v2421_v42 = vunpack.i.h.bf16 %v2419_v39  ;;  %v2420_v44 = vunpack.i.l.bf16 %v2419_v39 }
  0xa1   : > { %2713 = vrot.lane.b32.xlu1 %v3154_v43, %s2988_s29  ;;  %2708 = vrot.lane.b32.xlu0 %v3137_v37, %s2988_s29 }
  0xa2   : > { %486 = vst.msk [vmem:[#allocation2 + $0x28] sm:$0xff] %vm482_vm7, %v2426_v40  ;;  %485 = vst.msk [vmem:[#allocation2 + $0x20] sm:$0xff] %vm482_vm7, %v2425_v41 }
  0xa3   : > { %1360 = vst.msk [vmem:[#allocation2 - $0x1] sm:$0xfe] %vm1359_vm1, %v2420_v44  ;;  %v2434_v45 = vpop.permute.xlu1 %2433  ;;  %v2429_v46 = vpop.permute.xlu0 %2428 }
  0xa4   : > { %1362 = vst.msk [vmem:[#allocation2 + $0x7] sm:$0xff] %vm1361_vm2, %v2421_v42  ;;  %v2436_v48 = vunpack.i.h.bf16 %v2434_v45  ;;  %v2435_v49 = vunpack.i.l.bf16 %v2434_v45  ;;  %v2431_v50 = vunpack.i.h.bf16 %v2429_v46  ;;  %v2430_v51 = vunpack.i.l.bf16 %v2429_v46 }
  0xa5   : > { %2723 = vrot.lane.b32.xlu1 %v3162_v47, %s2989_s7  ;;  %2718 = vrot.lane.b32.xlu0 %v3154_v43, %s2989_s7 }
  0xa6   : > { %488 = vst.msk [vmem:[#allocation2 + $0x38] sm:$0xff] %vm482_vm7, %v2436_v48  ;;  %487 = vst.msk [vmem:[#allocation2 + $0x30] sm:$0xff] %vm482_vm7, %v2435_v49 }
  0xa7   : > { %1363 = vst.msk [vmem:[#allocation2 + $0xf] sm:$0xfe] %vm1359_vm1, %v2430_v51  ;;  %v2444_v37 = vpop.permute.xlu1 %2443  ;;  %v2439_v53 = vpop.permute.xlu0 %2438 }
  0xa8   : > { %1364 = vst.msk [vmem:[#allocation2 + $0x17] sm:$0xff] %vm1361_vm2, %v2431_v50  ;;  %v2446_v54 = vunpack.i.h.bf16 %v2444_v37  ;;  %v2445_v55 = vunpack.i.l.bf16 %v2444_v37  ;;  %v2441_v57 = vunpack.i.h.bf16 %v2439_v53  ;;  %v2440_v58 = vunpack.i.l.bf16 %v2439_v53 }
  0xa9   : > { %2733 = vrot.lane.b32.xlu1 %v3162_v47, %s2990_s10  ;;  %2728 = vrot.lane.b32.xlu0 %v3154_v43, %s2990_s10 }
  0xaa   : > { %609 = vst.msk [vmem:[#allocation2 + $0x2f] sm:$0xfe] %vm603_vm8, %v2445_v55  ;;  %607 = vst.msk [vmem:[#allocation2 + $0x1f] sm:$0xfe] %vm603_vm8, %v2440_v58 }
  0xab   : > { %v1391_v59 = vld [vmem:[#allocation2] sm:$0xff]  ;;  %v1392_v61 = vld [vmem:[#allocation2 + $0x8] sm:$0xff]  ;;  %610 = vst.msk [vmem:[#allocation2 + $0x37] sm:$0xff] %vm605_vm9, %v2446_v54  ;;  %608 = vst.msk [vmem:[#allocation2 + $0x27] sm:$0xff] %vm605_vm9, %v2441_v57  ;;  %v2454_v63 = vpop.permute.xlu1 %2453  ;;  %v2449_v1 = vpop.permute.xlu0 %2448 }
  0xac   : > { %v1423_v62 = vpack.c.bf16 %v1392_v61, %v1391_v59  ;;  %v2456_v2 = vunpack.i.h.bf16 %v2454_v63  ;;  %v2455_v3 = vunpack.i.l.bf16 %v2454_v63  ;;  %v2451_v4 = vunpack.i.h.bf16 %v2449_v1 }
  0xad   : > { %v2450_v5 = vunpack.i.l.bf16 %v2449_v1  ;;  %2743 = vrot.lane.b32.xlu1 %v3154_v43, %s2985_s26  ;;  %2738 = vrot.lane.b32.xlu0 %v3154_v43, %s2991_s13 }
  0xae   : > { %2272 = vmatprep.mubr.msk.bf16.mxu0 %vm290_vm0, %v1423_v62  ;;  %741 = vst.msk [vmem:[#allocation2 + $0x31] sm:$0xff] %vm733_vm5, %v2455_v3 }
  0xaf   : > { %v1393_v6 = vld [vmem:[#allocation2 + $0x10] sm:$0xff]  ;;  %v1394_v7 = vld [vmem:[#allocation2 + $0x18] sm:$0xff]  ;;  %742 = vst.msk [vmem:[#allocation2 + $0x39] sm:$0x7f] %vm735_vm6, %v2456_v2  ;;  %740 = vst.msk [vmem:[#allocation2 + $0x29] sm:$0x7f] %vm735_vm6, %v2451_v4  ;;  %v2464_v9 = vpop.permute.xlu1 %2463  ;;  %v2459_v10 = vpop.permute.xlu0 %2458 }
  0xb0   : > { %739 = vst.msk [vmem:[#allocation2 + $0x21] sm:$0xff] %vm733_vm5, %v2450_v5  ;;  %v1424_v8 = vpack.c.bf16 %v1394_v7, %v1393_v6  ;;  %v2466_v11 = vunpack.i.h.bf16 %v2464_v9  ;;  %v2465_v12 = vunpack.i.l.bf16 %v2464_v9  ;;  %v2461_v13 = vunpack.i.h.bf16 %v2459_v10 }
  0xb1   : > { %v2460_v14 = vunpack.i.l.bf16 %v2459_v10  ;;  %2753 = vrot.lane.b32.xlu1 %v3162_v47, %s2985_s26  ;;  %2748 = vrot.lane.b32.xlu0 %v3162_v47, %s2991_s13 }
  0xb2   : > { %2273 = vmatmul.mubr.msk.bf16.vlgmr.msra.gmra.mrb[0].mxu0 %vm290_vm0, %v1424_v8  ;;  %871 = vst.msk [vmem:[#allocation2 + $0x38] sm:$0xff] %vm863_vm10, %v2466_v11  ;;  %870 = vst.msk [vmem:[#allocation2 + $0x30] sm:$0xff] %vm863_vm10, %v2465_v12 }
  0xb3   : > { %869 = vst.msk [vmem:[#allocation2 + $0x28] sm:$0xff] %vm863_vm10, %v2461_v13  ;;  %868 = vst.msk [vmem:[#allocation2 + $0x20] sm:$0xff] %vm863_vm10, %v2460_v14  ;;  %v2474_v15 = vpop.permute.xlu1 %2473  ;;  %v2469_v16 = vpop.permute.xlu0 %2468 }
  0xb4   : > { %v2476_v17 = vunpack.i.h.bf16 %v2474_v15  ;;  %v2475_v18 = vunpack.i.l.bf16 %v2474_v15  ;;  %v2471_v19 = vunpack.i.h.bf16 %v2469_v16  ;;  %v2470_v20 = vunpack.i.l.bf16 %v2469_v16 }
  0xb5   : > { %2763 = vrot.lane.b32.xlu1 %v3162_v47, %s2986_s27  ;;  %2758 = vrot.lane.b32.xlu0 %v3154_v43, %s2986_s27 }
  0xb6   : > { %1000 = vst.msk [vmem:[#allocation2 + $0x2f] sm:$0xfe] %vm992_vm11, %v2475_v18  ;;  %998 = vst.msk [vmem:[#allocation2 + $0x1f] sm:$0xfe] %vm992_vm11, %v2470_v20 }
  0xb7   : > { %1001 = vst.msk [vmem:[#allocation2 + $0x37] sm:$0xff] %vm994_vm12, %v2476_v17  ;;  %999 = vst.msk [vmem:[#allocation2 + $0x27] sm:$0xff] %vm994_vm12, %v2471_v19  ;;  %v2484_v21 = vpop.permute.xlu1 %2483  ;;  %v2479_v22 = vpop.permute.xlu0 %2478 }
  0xb8   : > { %v2486_v23 = vunpack.i.h.bf16 %v2484_v21  ;;  %v2485_v24 = vunpack.i.l.bf16 %v2484_v21  ;;  %v2481_v25 = vunpack.i.h.bf16 %v2479_v22  ;;  %v2480_v26 = vunpack.i.l.bf16 %v2479_v22 }
  0xb9   : > { %2773 = vrot.lane.b32.xlu1 %v3178_v52, %s2984_s25  ;;  %2768 = vrot.lane.b32.xlu0 %v3162_v47, %s2984_s25 }
  0xba   : > { %1124 = vst.msk [vmem:[#allocation2 + $0x31] sm:$0xff] %vm1116_vm13, %v2485_v24  ;;  %1122 = vst.msk [vmem:[#allocation2 + $0x21] sm:$0xff] %vm1116_vm13, %v2480_v26 }
  0xbb   : > { %1125 = vst.msk [vmem:[#allocation2 + $0x39] sm:$0x7f] %vm1118_vm14, %v2486_v23  ;;  %1123 = vst.msk [vmem:[#allocation2 + $0x29] sm:$0x7f] %vm1118_vm14, %v2481_v25  ;;  %v2494_v43 = vpop.permute.xlu1 %2493  ;;  %v2489_v27 = vpop.permute.xlu0 %2488 }
  0xbc   : > { %v2496_v28 = vunpack.i.h.bf16 %v2494_v43  ;;  %v2495_v29 = vunpack.i.l.bf16 %v2494_v43  ;;  %v2491_v30 = vunpack.i.h.bf16 %v2489_v27  ;;  %v2490_v31 = vunpack.i.l.bf16 %v2489_v27 }
  0xbd   : > { %2783 = vrot.lane.b32.xlu1 %v3178_v52, %s2987_s28  ;;  %2778 = vrot.lane.b32.xlu0 %v3162_v47, %s2987_s28 }
  0xbe   : > { %1246 = vst.msk [vmem:[#allocation2 + $0x38] sm:$0xff] %vm1238_vm15, %v2496_v28  ;;  %1245 = vst.msk [vmem:[#allocation2 + $0x30] sm:$0xff] %vm1238_vm15, %v2495_v29 }
  0xbf   : > { %1244 = vst.msk [vmem:[#allocation2 + $0x28] sm:$0xff] %vm1238_vm15, %v2491_v30  ;;  %1243 = vst.msk [vmem:[#allocation2 + $0x20] sm:$0xff] %vm1238_vm15, %v2490_v31  ;;  %v2504_v32 = vpop.permute.xlu1 %2503  ;;  %v2499_v33 = vpop.permute.xlu0 %2498 }
  0xc0   : > { %v2506_v34 = vunpack.i.h.bf16 %v2504_v32  ;;  %v2505_v35 = vunpack.i.l.bf16 %v2504_v32  ;;  %v2501_v36 = vunpack.i.h.bf16 %v2499_v33  ;;  %v2500_v38 = vunpack.i.l.bf16 %v2499_v33 }
  0xc1   : > { %2793 = vrot.lane.b32.xlu1 %v3178_v52, %s2988_s29  ;;  %2788 = vrot.lane.b32.xlu0 %v3162_v47, %s2988_s29 }
  0xc2   : > { %490 = vst.msk [vmem:[#allocation2 + $0x48] sm:$0xff] %vm482_vm7, %v2506_v34  ;;  %489 = vst.msk [vmem:[#allocation2 + $0x40] sm:$0xff] %vm482_vm7, %v2505_v35 }
  0xc3   : > { %1365 = vst.msk [vmem:[#allocation2 + $0x1f] sm:$0xfe] %vm1359_vm1, %v2500_v38  ;;  %v2514_v39 = vpop.permute.xlu1 %2513  ;;  %v2509_v40 = vpop.permute.xlu0 %2508 }
  0xc4   : > { %1366 = vst.msk [vmem:[#allocation2 + $0x27] sm:$0xff] %vm1361_vm2, %v2501_v36  ;;  %v2516_v41 = vunpack.i.h.bf16 %v2514_v39  ;;  %v2515_v42 = vunpack.i.l.bf16 %v2514_v39  ;;  %v2511_v44 = vunpack.i.h.bf16 %v2509_v40  ;;  %v2510_v45 = vunpack.i.l.bf16 %v2509_v40 }
  0xc5   : > { %2803 = vrot.lane.b32.xlu1 %v3195_v56, %s2989_s7  ;;  %2798 = vrot.lane.b32.xlu0 %v3178_v52, %s2989_s7 }
  0xc6   : > { %492 = vst.msk [vmem:[#allocation2 + $0x58] sm:$0xff] %vm482_vm7, %v2516_v41  ;;  %491 = vst.msk [vmem:[#allocation2 + $0x50] sm:$0xff] %vm482_vm7, %v2515_v42 }
  0xc7   : > { %1368 = vst.msk [vmem:[#allocation2 + $0x37] sm:$0xff] %vm1361_vm2, %v2511_v44  ;;  %v2524_v47 = vpop.permute.xlu1 %2523  ;;  %v2519_v46 = vpop.permute.xlu0 %2518 }
  0xc8   : > { %1367 = vst.msk [vmem:[#allocation2 + $0x2f] sm:$0xfe] %vm1359_vm1, %v2510_v45  ;;  %v2526_v48 = vunpack.i.h.bf16 %v2524_v47  ;;  %v2525_v49 = vunpack.i.l.bf16 %v2524_v47  ;;  %v2521_v50 = vunpack.i.h.bf16 %v2519_v46  ;;  %v2520_v51 = vunpack.i.l.bf16 %v2519_v46 }
  0xc9   : > { %2813 = vrot.lane.b32.xlu1 %v3195_v56, %s2990_s10  ;;  %2808 = vrot.lane.b32.xlu0 %v3178_v52, %s2990_s10 }
  0xca   : > { %613 = vst.msk [vmem:[#allocation2 + $0x4f] sm:$0xfe] %vm603_vm8, %v2525_v49  ;;  %611 = vst.msk [vmem:[#allocation2 + $0x3f] sm:$0xfe] %vm603_vm8, %v2520_v51 }
  0xcb   : > { %v1395_v37 = vld [vmem:[#allocation2 + $0x20] sm:$0xff]  ;;  %v1396_v53 = vld [vmem:[#allocation2 + $0x28] sm:$0xff]  ;;  %614 = vst.msk [vmem:[#allocation2 + $0x57] sm:$0xff] %vm605_vm9, %v2526_v48  ;;  %612 = vst.msk [vmem:[#allocation2 + $0x47] sm:$0xff] %vm605_vm9, %v2521_v50  ;;  %v2534_v55 = vpop.permute.xlu1 %2533  ;;  %v2529_v57 = vpop.permute.xlu0 %2528 }
  0xcc   : > { %v1425_v54 = vpack.c.bf16 %v1396_v53, %v1395_v37  ;;  %v2536_v58 = vunpack.i.h.bf16 %v2534_v55  ;;  %v2535_v59 = vunpack.i.l.bf16 %v2534_v55  ;;  %v2531_v61 = vunpack.i.h.bf16 %v2529_v57 }
  0xcd   : > { %v2530_v62 = vunpack.i.l.bf16 %v2529_v57  ;;  %2823 = vrot.lane.b32.xlu1 %v3178_v52, %s2985_s26  ;;  %2818 = vrot.lane.b32.xlu0 %v3178_v52, %s2991_s13 }
  0xce   : > { %2276 = vmatprep.mubr.msk.bf16.mxu0 %vm290_vm0, %v1425_v54  ;;  %v1398_v1 = vld [vmem:[#allocation2 + $0x38] sm:$0xff]  ;;  %745 = vst.msk [vmem:[#allocation2 + $0x51] sm:$0xff] %vm733_vm5, %v2535_v59 }
  0xcf   : > { %v1397_v63 = vld [vmem:[#allocation2 + $0x30] sm:$0xff]  ;;  %746 = vst.msk [vmem:[#allocation2 + $0x59] sm:$0x7f] %vm735_vm6, %v2536_v58  ;;  %744 = vst.msk [vmem:[#allocation2 + $0x49] sm:$0x7f] %vm735_vm6, %v2531_v61  ;;  %v2544_v3 = vpop.permute.xlu1 %2543  ;;  %v2539_v4 = vpop.permute.xlu0 %2538 }
  0xd0   : > { %743 = vst.msk [vmem:[#allocation2 + $0x41] sm:$0xff] %vm733_vm5, %v2530_v62  ;;  %v1426_v2 = vpack.c.bf16 %v1398_v1, %v1397_v63  ;;  %v2546_v5 = vunpack.i.h.bf16 %v2544_v3  ;;  %v2545_v6 = vunpack.i.l.bf16 %v2544_v3  ;;  %v2541_v7 = vunpack.i.h.bf16 %v2539_v4  ;;  %v2229_v1 = vld [vmem:[%s3082_s24 + $0x78] sm:$0xff]  }
  0xd1   : > { %v2540_v8 = vunpack.i.l.bf16 %v2539_v4  ;;  %2833 = vrot.lane.b32.xlu1 %v3195_v56, %s2985_s26  ;;  %2828 = vrot.lane.b32.xlu0 %v3195_v56, %s2991_s13 }
  0xd2   : > { %2277 = vmatmul.mubr.msk.bf16.gmra.mrb[4].mxu0 %vm290_vm0, %v1426_v2  ;;  %875 = vst.msk [vmem:[#allocation2 + $0x58] sm:$0xff] %vm863_vm10, %v2546_v5  ;;  %874 = vst.msk [vmem:[#allocation2 + $0x50] sm:$0xff] %vm863_vm10, %v2545_v6 }
  0xd3   : > { %873 = vst.msk [vmem:[#allocation2 + $0x48] sm:$0xff] %vm863_vm10, %v2541_v7  ;;  %872 = vst.msk [vmem:[#allocation2 + $0x40] sm:$0xff] %vm863_vm10, %v2540_v8  ;;  %v2554_v9 = vpop.permute.xlu1 %2553  ;;  %v2549_v10 = vpop.permute.xlu0 %2548  ;;  %v2214_v8 = vunpack.c.h.bf16 %v2229_v1 }
  0xd4   : > { %v2556_v11 = vunpack.i.h.bf16 %v2554_v9  ;;  %v2555_v12 = vunpack.i.l.bf16 %v2554_v9  ;;  %v2551_v13 = vunpack.i.h.bf16 %v2549_v10  ;;  %v2550_v14 = vunpack.i.l.bf16 %v2549_v10 }
  0xd5   : > { %2843 = vrot.lane.b32.xlu1 %v3195_v56, %s2986_s27  ;;  %2838 = vrot.lane.b32.xlu0 %v3178_v52, %s2986_s27 }
  0xd6   : > { %1004 = vst.msk [vmem:[#allocation2 + $0x4f] sm:$0xfe] %vm992_vm11, %v2555_v12  ;;  %1002 = vst.msk [vmem:[#allocation2 + $0x3f] sm:$0xfe] %vm992_vm11, %v2550_v14 }
  0xd7   : > { %1005 = vst.msk [vmem:[#allocation2 + $0x57] sm:$0xff] %vm994_vm12, %v2556_v11  ;;  %1003 = vst.msk [vmem:[#allocation2 + $0x47] sm:$0xff] %vm994_vm12, %v2551_v13  ;;  %v2564_v15 = vpop.permute.xlu1 %2563  ;;  %v2559_v16 = vpop.permute.xlu0 %2558 }
  0xd8   : > { %v2566_v17 = vunpack.i.h.bf16 %v2564_v15  ;;  %v2565_v18 = vunpack.i.l.bf16 %v2564_v15  ;;  %v2561_v19 = vunpack.i.h.bf16 %v2559_v16  ;;  %v2560_v20 = vunpack.i.l.bf16 %v2559_v16 }
  0xd9   : > { %2853 = vrot.lane.b32.xlu1 %v3220_v60, %s2984_s25  ;;  %2848 = vrot.lane.b32.xlu0 %v3195_v56, %s2984_s25 }
  0xda   : > { %1128 = vst.msk [vmem:[#allocation2 + $0x51] sm:$0xff] %vm1116_vm13, %v2565_v18  ;;  %1126 = vst.msk [vmem:[#allocation2 + $0x41] sm:$0xff] %vm1116_vm13, %v2560_v20 }
  0xdb   : > { %1129 = vst.msk [vmem:[#allocation2 + $0x59] sm:$0x7f] %vm1118_vm14, %v2566_v17  ;;  %1127 = vst.msk [vmem:[#allocation2 + $0x49] sm:$0x7f] %vm1118_vm14, %v2561_v19  ;;  %v2574_v52 = vpop.permute.xlu1 %2573  ;;  %v2569_v21 = vpop.permute.xlu0 %2568 }
  0xdc   : > { %v2576_v22 = vunpack.i.h.bf16 %v2574_v52  ;;  %v2575_v23 = vunpack.i.l.bf16 %v2574_v52  ;;  %v2571_v24 = vunpack.i.h.bf16 %v2569_v21  ;;  %v2570_v25 = vunpack.i.l.bf16 %v2569_v21 }
  0xdd   : > { %2863 = vrot.lane.b32.xlu1 %v3220_v60, %s2987_s28  ;;  %2858 = vrot.lane.b32.xlu0 %v3195_v56, %s2987_s28 }
  0xde   : > { %1250 = vst.msk [vmem:[#allocation2 + $0x58] sm:$0xff] %vm1238_vm15, %v2576_v22  ;;  %1249 = vst.msk [vmem:[#allocation2 + $0x50] sm:$0xff] %vm1238_vm15, %v2575_v23 }
  0xdf   : > { %1248 = vst.msk [vmem:[#allocation2 + $0x48] sm:$0xff] %vm1238_vm15, %v2571_v24  ;;  %1247 = vst.msk [vmem:[#allocation2 + $0x40] sm:$0xff] %vm1238_vm15, %v2570_v25  ;;  %v2584_v26 = vpop.permute.xlu1 %2583  ;;  %v2579_v43 = vpop.permute.xlu0 %2578 }
  0xe0   : > { %v2586_v27 = vunpack.i.h.bf16 %v2584_v26  ;;  %v2585_v28 = vunpack.i.l.bf16 %v2584_v26  ;;  %v2581_v29 = vunpack.i.h.bf16 %v2579_v43  ;;  %v2580_v30 = vunpack.i.l.bf16 %v2579_v43 }
  0xe1   : > { %2873 = vrot.lane.b32.xlu1 %v3220_v60, %s2988_s29  ;;  %2868 = vrot.lane.b32.xlu0 %v3195_v56, %s2988_s29 }
  0xe2   : > { %494 = vst.msk [vmem:[#allocation2 + $0x68] sm:$0xff] %vm482_vm7, %v2586_v27  ;;  %493 = vst.msk [vmem:[#allocation2 + $0x60] sm:$0xff] %vm482_vm7, %v2585_v28 }
  0xe3   : > { %1369 = vst.msk [vmem:[#allocation2 + $0x3f] sm:$0xfe] %vm1359_vm1, %v2580_v30  ;;  %v2594_v31 = vpop.permute.xlu1 %2593  ;;  %v2589_v32 = vpop.permute.xlu0 %2588 }
  0xe4   : > { %1370 = vst.msk [vmem:[#allocation2 + $0x47] sm:$0xff] %vm1361_vm2, %v2581_v29  ;;  %v2596_v33 = vunpack.i.h.bf16 %v2594_v31  ;;  %v2595_v34 = vunpack.i.l.bf16 %v2594_v31  ;;  %v2591_v35 = vunpack.i.h.bf16 %v2589_v32  ;;  %v2590_v36 = vunpack.i.l.bf16 %v2589_v32 }
  0xe5   : > { %2883 = vrot.lane.b32.xlu1 %v3237_v0, %s2989_s7  ;;  %2878 = vrot.lane.b32.xlu0 %v3220_v60, %s2989_s7 }
  0xe6   : > { %496 = vst.msk [vmem:[#allocation2 + $0x78] sm:$0xff] %vm482_vm7, %v2596_v33  ;;  %495 = vst.msk [vmem:[#allocation2 + $0x70] sm:$0xff] %vm482_vm7, %v2595_v34 }
  0xe7   : > { %1372 = vst.msk [vmem:[#allocation2 + $0x57] sm:$0xff] %vm1361_vm2, %v2591_v35  ;;  %v2604_v56 = vpop.permute.xlu1 %2603  ;;  %v2599_v38 = vpop.permute.xlu0 %2598 }
  0xe8   : > { %1371 = vst.msk [vmem:[#allocation2 + $0x4f] sm:$0xfe] %vm1359_vm1, %v2590_v36  ;;  %v2606_v39 = vunpack.i.h.bf16 %v2604_v56  ;;  %v2605_v40 = vunpack.i.l.bf16 %v2604_v56  ;;  %v2601_v41 = vunpack.i.h.bf16 %v2599_v38  ;;  %v2600_v42 = vunpack.i.l.bf16 %v2599_v38 }
  0xe9   : > { %2893 = vrot.lane.b32.xlu1 %v3237_v0, %s2990_s10  ;;  %2888 = vrot.lane.b32.xlu0 %v3220_v60, %s2990_s10 }
  0xea   : > { %617 = vst.msk [vmem:[#allocation2 + $0x6f] sm:$0xfe] %vm603_vm8, %v2605_v40  ;;  %615 = vst.msk [vmem:[#allocation2 + $0x5f] sm:$0xfe] %vm603_vm8, %v2600_v42  ;;  %v1791_v40 = vld [vmem:[%s3833_s3] sm:$0xf] }
  0xeb   : > { %v1399_v44 = vld [vmem:[#allocation2 + $0x40] sm:$0xff]  ;;  %v1400_v45 = vld [vmem:[#allocation2 + $0x48] sm:$0xff]  ;;  %618 = vst.msk [vmem:[#allocation2 + $0x77] sm:$0xff] %vm605_vm9, %v2606_v39  ;;  %616 = vst.msk [vmem:[#allocation2 + $0x67] sm:$0xff] %vm605_vm9, %v2601_v41  ;;  %v2614_v46 = vpop.permute.xlu1 %2613  ;;  %v2609_v48 = vpop.permute.xlu0 %2608  ;;  %2339 = vmatprep.subr.msk.bf16.mxu1 %vm1848_vm3, %v1791_v40 }
  0xec   : > { %v1427_v47 = vpack.c.bf16 %v1400_v45, %v1399_v44  ;;  %v2616_v49 = vunpack.i.h.bf16 %v2614_v46  ;;  %v2615_v50 = vunpack.i.l.bf16 %v2614_v46  ;;  %v2611_v51 = vunpack.i.h.bf16 %v2609_v48 }
  0xed   : > { %v2610_v37 = vunpack.i.l.bf16 %v2609_v48  ;;  %2903 = vrot.lane.b32.xlu1 %v3220_v60, %s2985_s26  ;;  %2898 = vrot.lane.b32.xlu0 %v3220_v60, %s2991_s13  ;;  %v1850_v44 = vsel %vm1848_vm3, %v1791_v40, 0 }
  0xee   : > { %2280 = vmatprep.mubr.msk.bf16.mxu0 %vm290_vm0, %v1427_v47  ;;  %v1402_v54 = vld [vmem:[#allocation2 + $0x58] sm:$0xff]  ;;  %749 = vst.msk [vmem:[#allocation2 + $0x71] sm:$0xff] %vm733_vm5, %v2615_v50  ;;  %2305 = vmatpush3.bf16.msra.mxu1 %v1850_v44 }
  0xef   : > { %v1401_v53 = vld [vmem:[#allocation2 + $0x50] sm:$0xff]  ;;  %750 = vst.msk [vmem:[#allocation2 + $0x79] sm:$0x7f] %vm735_vm6, %v2616_v49  ;;  %748 = vst.msk [vmem:[#allocation2 + $0x69] sm:$0x7f] %vm735_vm6, %v2611_v51  ;;  %v2624_v57 = vpop.permute.xlu1 %2623  ;;  %v2619_v58 = vpop.permute.xlu0 %2618 }
  0xf0   : > { %747 = vst.msk [vmem:[#allocation2 + $0x61] sm:$0xff] %vm733_vm5, %v2610_v37  ;;  %v1428_v55 = vpack.c.bf16 %v1402_v54, %v1401_v53  ;;  %v2626_v59 = vunpack.i.h.bf16 %v2624_v57  ;;  %v2625_v61 = vunpack.i.l.bf16 %v2624_v57  ;;  %v2621_v62 = vunpack.i.h.bf16 %v2619_v58 }
  0xf1   : > { %v2620_v63 = vunpack.i.l.bf16 %v2619_v58  ;;  %2913 = vrot.lane.b32.xlu1 %v3220_v60, %s2986_s27  ;;  %2908 = vrot.lane.b32.xlu0 %v3237_v0, %s2991_s13  ;;  %v2213_v60 = vunpack.c.l.bf16 %v2229_v1 }
  0xf2   : > { %2281 = vmatmul.mubr.msk.bf16.gmra.mrb[8].mxu0 %vm290_vm0, %v1428_v55  ;;  %879 = vst.msk [vmem:[#allocation2 + $0x78] sm:$0xff] %vm863_vm10, %v2626_v59  ;;  %878 = vst.msk [vmem:[#allocation2 + $0x70] sm:$0xff] %vm863_vm10, %v2625_v61 }
  0xf3   : > { %877 = vst.msk [vmem:[#allocation2 + $0x68] sm:$0xff] %vm863_vm10, %v2621_v62  ;;  %876 = vst.msk [vmem:[#allocation2 + $0x60] sm:$0xff] %vm863_vm10, %v2620_v63  ;;  %v2634_v2 = vpop.permute.xlu1 %2633  ;;  %v2629_v3 = vpop.permute.xlu0 %2628  ;;  %v2942_v15 = vpack.i.bf16 %v2214_v8, %v2213_v60 }
  0xf4   : > { %v2636_v4 = vunpack.i.h.bf16 %v2634_v2  ;;  %v2635_v5 = vunpack.i.l.bf16 %v2634_v2  ;;  %v2631_v6 = vunpack.i.h.bf16 %v2629_v3  ;;  %v2630_v7 = vunpack.i.l.bf16 %v2629_v3 }
  0xf5   : > { %2923 = vrot.lane.b32.xlu1 %v3237_v0, %s2987_s28  ;;  %2918 = vrot.lane.b32.xlu0 %v3237_v0, %s2984_s25 }
  0xf6   : > { %1008 = vst.msk [vmem:[#allocation2 + $0x6f] sm:$0xfe] %vm992_vm11, %v2635_v5  ;;  %1006 = vst.msk [vmem:[#allocation2 + $0x5f] sm:$0xfe] %vm992_vm11, %v2630_v7 }
  0xf7   : > { %1009 = vst.msk [vmem:[#allocation2 + $0x77] sm:$0xff] %vm994_vm12, %v2636_v4  ;;  %1007 = vst.msk [vmem:[#allocation2 + $0x67] sm:$0xff] %vm994_vm12, %v2631_v6  ;;  %v2644_v9 = vpop.permute.xlu1 %2643  ;;  %v2639_v10 = vpop.permute.xlu0 %2638 }
  0xf8   : > { %v2646_v11 = vunpack.i.h.bf16 %v2644_v9  ;;  %v2645_v12 = vunpack.i.l.bf16 %v2644_v9  ;;  %v2641_v13 = vunpack.i.h.bf16 %v2639_v10  ;;  %v2640_v14 = vunpack.i.l.bf16 %v2639_v10 }
  0xf9   : > { %2933 = vrot.lane.b32.xlu1 %v3237_v0, %s2988_s29  ;;  %2928 = vrot.lane.b32.xlu0 %v3237_v0, %s2985_s26 }
  0xfa   : > { %1132 = vst.msk [vmem:[#allocation2 + $0x71] sm:$0xff] %vm1116_vm13, %v2645_v12  ;;  %1130 = vst.msk [vmem:[#allocation2 + $0x61] sm:$0xff] %vm1116_vm13, %v2640_v14 }
  0xfb   : > { %1133 = vst.msk [vmem:[#allocation2 + $0x79] sm:$0x7f] %vm1118_vm14, %v2646_v11  ;;  %1131 = vst.msk [vmem:[#allocation2 + $0x69] sm:$0x7f] %vm1118_vm14, %v2641_v13  ;;  %v2654_v16 = vpop.permute.xlu1 %2653  ;;  %v2649_v17 = vpop.permute.xlu0 %2648 }
  0xfc   : > { %v2656_v18 = vunpack.i.h.bf16 %v2654_v16  ;;  %v2655_v19 = vunpack.i.l.bf16 %v2654_v16  ;;  %v2651_v20 = vunpack.i.h.bf16 %v2649_v17  ;;  %v2650_v52 = vunpack.i.l.bf16 %v2649_v17 }
  0xfd   : > { %2943 = vrot.lane.b32.xlu1 %v2942_v15, %s2989_s7  ;;  %2938 = vrot.lane.b32.xlu0 %v3237_v0, %s2986_s27 }
  0xfe   : > { %1254 = vst.msk [vmem:[#allocation2 + $0x78] sm:$0xff] %vm1238_vm15, %v2656_v18  ;;  %1253 = vst.msk [vmem:[#allocation2 + $0x70] sm:$0xff] %vm1238_vm15, %v2655_v19 }
  0xff   : > { %1252 = vst.msk [vmem:[#allocation2 + $0x68] sm:$0xff] %vm1238_vm15, %v2651_v20  ;;  %1251 = vst.msk [vmem:[#allocation2 + $0x60] sm:$0xff] %vm1238_vm15, %v2650_v52  ;;  %v2664_v21 = vpop.permute.xlu1 %2663  ;;  %v2659_v22 = vpop.permute.xlu0 %2658 }
 0x100   : > { %v2666_v23 = vunpack.i.h.bf16 %v2664_v21  ;;  %v2665_v24 = vunpack.i.l.bf16 %v2664_v21  ;;  %v2661_v25 = vunpack.i.h.bf16 %v2659_v22  ;;  %v2660_v26 = vunpack.i.l.bf16 %v2659_v22 }
 0x101   : > { %2953 = vrot.lane.b32.xlu1 %v2942_v15, %s2990_s10  ;;  %2948 = vrot.lane.b32.xlu0 %v2942_v15, %s2984_s25  ;;  %s3727_s25 = scalar_lea.vmem %s3835_s5, %s2150_s20 }
 0x102   : > { %498 = vst.msk [vmem:[#allocation2 + $0x88] sm:$0xff] %vm482_vm7, %v2666_v23  ;;  %497 = vst.msk [vmem:[#allocation2 + $0x80] sm:$0xff] %vm482_vm7, %v2665_v24 }
 0x103   : > { %1373 = vst.msk [vmem:[#allocation2 + $0x5f] sm:$0xfe] %vm1359_vm1, %v2660_v26  ;;  %v2674_v0 = vpop.permute.xlu1 %2673  ;;  %v2669_v43 = vpop.permute.xlu0 %2668 }
 0x104   : > { %1374 = vst.msk [vmem:[#allocation2 + $0x67] sm:$0xff] %vm1361_vm2, %v2661_v25  ;;  %v2676_v27 = vunpack.i.h.bf16 %v2674_v0  ;;  %v2675_v28 = vunpack.i.l.bf16 %v2674_v0  ;;  %v2671_v29 = vunpack.i.h.bf16 %v2669_v43  ;;  %v2670_v30 = vunpack.i.l.bf16 %v2669_v43 }
 0x105   : > { %2963 = vrot.lane.b32.xlu1 %v2942_v15, %s2991_s13  ;;  %2958 = vrot.lane.b32.xlu0 %v2942_v15, %s2987_s28 }
 0x106   : > { %500 = vst.msk [vmem:[#allocation2 + $0x98] sm:$0xff] %vm482_vm7, %v2676_v27  ;;  %499 = vst.msk [vmem:[#allocation2 + $0x90] sm:$0xff] %vm482_vm7, %v2675_v28 }
 0x107   : > { %1376 = vst.msk [vmem:[#allocation2 + $0x77] sm:$0xff] %vm1361_vm2, %v2671_v29  ;;  %v2684_v31 = vpop.permute.xlu1 %2683  ;;  %v2679_v32 = vpop.permute.xlu0 %2678 }
 0x108   : > { %1375 = vst.msk [vmem:[#allocation2 + $0x6f] sm:$0xfe] %vm1359_vm1, %v2670_v30  ;;  %v2686_v33 = vunpack.i.h.bf16 %v2684_v31  ;;  %v2685_v34 = vunpack.i.l.bf16 %v2684_v31  ;;  %v2681_v35 = vunpack.i.h.bf16 %v2679_v32  ;;  %v2680_v36 = vunpack.i.l.bf16 %v2679_v32 }
 0x109   : > { %2968 = vrot.lane.b32.xlu0 %v2942_v15, %s2988_s29 }
 0x10a   : > { %621 = vst.msk [vmem:[#allocation2 + $0x8f] sm:$0xfe] %vm603_vm8, %v2685_v34  ;;  %619 = vst.msk [vmem:[#allocation2 + $0x7f] sm:$0xfe] %vm603_vm8, %v2680_v36 }
 0x10b   : > { %v1403_v56 = vld [vmem:[#allocation2 + $0x60] sm:$0xff]  ;;  %v1404_v38 = vld [vmem:[#allocation2 + $0x68] sm:$0xff]  ;;  %622 = vst.msk [vmem:[#allocation2 + $0x97] sm:$0xff] %vm605_vm9, %v2686_v33  ;;  %620 = vst.msk [vmem:[#allocation2 + $0x87] sm:$0xff] %vm605_vm9, %v2681_v35  ;;  %v2694_v41 = vpop.permute.xlu1 %2693  ;;  %v2689_v42 = vpop.permute.xlu0 %2688 }
 0x10c   : > { %v1429_v39 = vpack.c.bf16 %v1404_v38, %v1403_v56  ;;  %v2696_v45 = vunpack.i.h.bf16 %v2694_v41  ;;  %v2695_v47 = vunpack.i.l.bf16 %v2694_v41  ;;  %v2691_v46 = vunpack.i.h.bf16 %v2689_v42 }
 0x10d   : > { %v2690_v48 = vunpack.i.l.bf16 %v2689_v42 }
 0x10e   : > { %2284 = vmatprep.mubr.msk.bf16.mxu0 %vm290_vm0, %v1429_v39  ;;  %v1406_v50 = vld [vmem:[#allocation2 + $0x78] sm:$0xff]  ;;  %753 = vst.msk [vmem:[#allocation2 + $0x91] sm:$0xff] %vm733_vm5, %v2695_v47 }
 0x10f   : > { %v1405_v49 = vld [vmem:[#allocation2 + $0x70] sm:$0xff]  ;;  %754 = vst.msk [vmem:[#allocation2 + $0x99] sm:$0x7f] %vm735_vm6, %v2696_v45  ;;  %752 = vst.msk [vmem:[#allocation2 + $0x89] sm:$0x7f] %vm735_vm6, %v2691_v46  ;;  %v2704_v37 = vpop.permute.xlu1 %2703  ;;  %v2699_v53 = vpop.permute.xlu0 %2698 }
 0x110   : > { %751 = vst.msk [vmem:[#allocation2 + $0x81] sm:$0xff] %vm733_vm5, %v2690_v48  ;;  %v1430_v51 = vpack.c.bf16 %v1406_v50, %v1405_v49  ;;  %v2706_v54 = vunpack.i.h.bf16 %v2704_v37  ;;  %v2705_v55 = vunpack.i.l.bf16 %v2704_v37  ;;  %v2701_v57 = vunpack.i.h.bf16 %v2699_v53 }
 0x111   : > { %v2700_v58 = vunpack.i.l.bf16 %v2699_v53 }
 0x112   : > { %2285 = vmatmul.mubr.msk.bf16.gmra.mrb[12].mxu0 %vm290_vm0, %v1430_v51  ;;  %883 = vst.msk [vmem:[#allocation2 + $0x98] sm:$0xff] %vm863_vm10, %v2706_v54  ;;  %882 = vst.msk [vmem:[#allocation2 + $0x90] sm:$0xff] %vm863_vm10, %v2705_v55 }
 0x113   : > { %881 = vst.msk [vmem:[#allocation2 + $0x88] sm:$0xff] %vm863_vm10, %v2701_v57  ;;  %880 = vst.msk [vmem:[#allocation2 + $0x80] sm:$0xff] %vm863_vm10, %v2700_v58  ;;  %v2714_v59 = vpop.permute.xlu1 %2713  ;;  %v2709_v61 = vpop.permute.xlu0 %2708 }
 0x114   : > { %v2716_v62 = vunpack.i.h.bf16 %v2714_v59  ;;  %v2715_v63 = vunpack.i.l.bf16 %v2714_v59  ;;  %v2711_v1 = vunpack.i.h.bf16 %v2709_v61  ;;  %v2710_v2 = vunpack.i.l.bf16 %v2709_v61 }
 0x116   : > { %1012 = vst.msk [vmem:[#allocation2 + $0x8f] sm:$0xfe] %vm992_vm11, %v2715_v63  ;;  %1010 = vst.msk [vmem:[#allocation2 + $0x7f] sm:$0xfe] %vm992_vm11, %v2710_v2 }
 0x117   : > { %1013 = vst.msk [vmem:[#allocation2 + $0x97] sm:$0xff] %vm994_vm12, %v2716_v62  ;;  %1011 = vst.msk [vmem:[#allocation2 + $0x87] sm:$0xff] %vm994_vm12, %v2711_v1  ;;  %v2724_v3 = vpop.permute.xlu1 %2723  ;;  %v2719_v4 = vpop.permute.xlu0 %2718 }
 0x118   : > { %v2726_v5 = vunpack.i.h.bf16 %v2724_v3  ;;  %v2725_v6 = vunpack.i.l.bf16 %v2724_v3  ;;  %v2721_v7 = vunpack.i.h.bf16 %v2719_v4  ;;  %v2720_v60 = vunpack.i.l.bf16 %v2719_v4 }
 0x11a   : > { %1136 = vst.msk [vmem:[#allocation2 + $0x91] sm:$0xff] %vm1116_vm13, %v2725_v6  ;;  %1134 = vst.msk [vmem:[#allocation2 + $0x81] sm:$0xff] %vm1116_vm13, %v2720_v60 }
 0x11b   : > { %1137 = vst.msk [vmem:[#allocation2 + $0x99] sm:$0x7f] %vm1118_vm14, %v2726_v5  ;;  %1135 = vst.msk [vmem:[#allocation2 + $0x89] sm:$0x7f] %vm1118_vm14, %v2721_v7  ;;  %v2734_v8 = vpop.permute.xlu1 %2733  ;;  %v2729_v9 = vpop.permute.xlu0 %2728 }
 0x11c   : > { %v2736_v10 = vunpack.i.h.bf16 %v2734_v8  ;;  %v2735_v11 = vunpack.i.l.bf16 %v2734_v8  ;;  %v2731_v12 = vunpack.i.h.bf16 %v2729_v9  ;;  %v2730_v13 = vunpack.i.l.bf16 %v2729_v9 }
 0x11e   : > { %1258 = vst.msk [vmem:[#allocation2 + $0x98] sm:$0xff] %vm1238_vm15, %v2736_v10  ;;  %1257 = vst.msk [vmem:[#allocation2 + $0x90] sm:$0xff] %vm1238_vm15, %v2735_v11 }
 0x11f   : > { %1256 = vst.msk [vmem:[#allocation2 + $0x88] sm:$0xff] %vm1238_vm15, %v2731_v12  ;;  %1255 = vst.msk [vmem:[#allocation2 + $0x80] sm:$0xff] %vm1238_vm15, %v2730_v13  ;;  %v2744_v14 = vpop.permute.xlu1 %2743  ;;  %v2739_v15 = vpop.permute.xlu0 %2738 }
 0x120   : > { %v2746_v16 = vunpack.i.h.bf16 %v2744_v14  ;;  %v2745_v17 = vunpack.i.l.bf16 %v2744_v14  ;;  %v2741_v18 = vunpack.i.h.bf16 %v2739_v15  ;;  %v2740_v19 = vunpack.i.l.bf16 %v2739_v15 }
 0x122   : > { %502 = vst.msk [vmem:[#allocation2 + $0xa8] sm:$0xff] %vm482_vm7, %v2746_v16  ;;  %501 = vst.msk [vmem:[#allocation2 + $0xa0] sm:$0xff] %vm482_vm7, %v2745_v17 }
 0x123   : > { %1377 = vst.msk [vmem:[#allocation2 + $0x7f] sm:$0xfe] %vm1359_vm1, %v2740_v19  ;;  %v2754_v20 = vpop.permute.xlu1 %2753  ;;  %v2749_v52 = vpop.permute.xlu0 %2748 }
 0x124   : > { %1378 = vst.msk [vmem:[#allocation2 + $0x87] sm:$0xff] %vm1361_vm2, %v2741_v18  ;;  %v2756_v21 = vunpack.i.h.bf16 %v2754_v20  ;;  %v2755_v22 = vunpack.i.l.bf16 %v2754_v20  ;;  %v2751_v23 = vunpack.i.h.bf16 %v2749_v52  ;;  %v2750_v24 = vunpack.i.l.bf16 %v2749_v52 }
 0x126   : > { %504 = vst.msk [vmem:[#allocation2 + $0xb8] sm:$0xff] %vm482_vm7, %v2756_v21  ;;  %503 = vst.msk [vmem:[#allocation2 + $0xb0] sm:$0xff] %vm482_vm7, %v2755_v22 }
 0x127   : > { %1380 = vst.msk [vmem:[#allocation2 + $0x97] sm:$0xff] %vm1361_vm2, %v2751_v23  ;;  %v2764_v25 = vpop.permute.xlu1 %2763  ;;  %v2759_v26 = vpop.permute.xlu0 %2758 }
 0x128   : > { %1379 = vst.msk [vmem:[#allocation2 + $0x8f] sm:$0xfe] %vm1359_vm1, %v2750_v24  ;;  %v2766_v0 = vunpack.i.h.bf16 %v2764_v25  ;;  %v2765_v43 = vunpack.i.l.bf16 %v2764_v25  ;;  %v2761_v27 = vunpack.i.h.bf16 %v2759_v26  ;;  %v2760_v28 = vunpack.i.l.bf16 %v2759_v26 }
 0x12a   : > { %625 = vst.msk [vmem:[#allocation2 + $0xaf] sm:$0xfe] %vm603_vm8, %v2765_v43  ;;  %623 = vst.msk [vmem:[#allocation2 + $0x9f] sm:$0xfe] %vm603_vm8, %v2760_v28 }
 0x12b   : > { %v1407_v29 = vld [vmem:[#allocation2 + $0x80] sm:$0xff]  ;;  %v1408_v30 = vld [vmem:[#allocation2 + $0x88] sm:$0xff]  ;;  %626 = vst.msk [vmem:[#allocation2 + $0xb7] sm:$0xff] %vm605_vm9, %v2766_v0  ;;  %624 = vst.msk [vmem:[#allocation2 + $0xa7] sm:$0xff] %vm605_vm9, %v2761_v27  ;;  %v2774_v32 = vpop.permute.xlu1 %2773  ;;  %v2769_v33 = vpop.permute.xlu0 %2768 }
 0x12c   : > { %v1431_v31 = vpack.c.bf16 %v1408_v30, %v1407_v29  ;;  %v2776_v34 = vunpack.i.h.bf16 %v2774_v32  ;;  %v2775_v35 = vunpack.i.l.bf16 %v2774_v32  ;;  %v2771_v36 = vunpack.i.h.bf16 %v2769_v33 }
 0x12d   : > { %v2770_v56 = vunpack.i.l.bf16 %v2769_v33 }
 0x12e   : > { %2288 = vmatprep.mubr.msk.bf16.mxu0 %vm290_vm0, %v1431_v31  ;;  %v1410_v39 = vld [vmem:[#allocation2 + $0x98] sm:$0xff]  ;;  %757 = vst.msk [vmem:[#allocation2 + $0xb1] sm:$0xff] %vm733_vm5, %v2775_v35 }
 0x12f   : > { %v1409_v38 = vld [vmem:[#allocation2 + $0x90] sm:$0xff]  ;;  %758 = vst.msk [vmem:[#allocation2 + $0xb9] sm:$0x7f] %vm735_vm6, %v2776_v34  ;;  %756 = vst.msk [vmem:[#allocation2 + $0xa9] sm:$0x7f] %vm735_vm6, %v2771_v36  ;;  %v2784_v41 = vpop.permute.xlu1 %2783  ;;  %v2779_v42 = vpop.permute.xlu0 %2778 }
 0x130   : > { %755 = vst.msk [vmem:[#allocation2 + $0xa1] sm:$0xff] %vm733_vm5, %v2770_v56  ;;  %v1432_v40 = vpack.c.bf16 %v1410_v39, %v1409_v38  ;;  %v2786_v44 = vunpack.i.h.bf16 %v2784_v41  ;;  %v2785_v45 = vunpack.i.l.bf16 %v2784_v41  ;;  %v2781_v47 = vunpack.i.h.bf16 %v2779_v42 }
 0x131   : > { %v2780_v46 = vunpack.i.l.bf16 %v2779_v42 }
 0x132   : > { %2289 = vmatmul.mubr.msk.bf16.gmra.mrb[16].mxu0 %vm290_vm0, %v1432_v40  ;;  %887 = vst.msk [vmem:[#allocation2 + $0xb8] sm:$0xff] %vm863_vm10, %v2786_v44  ;;  %886 = vst.msk [vmem:[#allocation2 + $0xb0] sm:$0xff] %vm863_vm10, %v2785_v45 }
 0x133   : > { %885 = vst.msk [vmem:[#allocation2 + $0xa8] sm:$0xff] %vm863_vm10, %v2781_v47  ;;  %884 = vst.msk [vmem:[#allocation2 + $0xa0] sm:$0xff] %vm863_vm10, %v2780_v46  ;;  %v2794_v48 = vpop.permute.xlu1 %2793  ;;  %v2789_v49 = vpop.permute.xlu0 %2788 }
 0x134   : > { %v2796_v50 = vunpack.i.h.bf16 %v2794_v48  ;;  %v2795_v51 = vunpack.i.l.bf16 %v2794_v48  ;;  %v2791_v37 = vunpack.i.h.bf16 %v2789_v49  ;;  %v2790_v53 = vunpack.i.l.bf16 %v2789_v49 }
 0x136   : > { %1016 = vst.msk [vmem:[#allocation2 + $0xaf] sm:$0xfe] %vm992_vm11, %v2795_v51  ;;  %1014 = vst.msk [vmem:[#allocation2 + $0x9f] sm:$0xfe] %vm992_vm11, %v2790_v53 }
 0x137   : > { %1017 = vst.msk [vmem:[#allocation2 + $0xb7] sm:$0xff] %vm994_vm12, %v2796_v50  ;;  %1015 = vst.msk [vmem:[#allocation2 + $0xa7] sm:$0xff] %vm994_vm12, %v2791_v37  ;;  %v2804_v54 = vpop.permute.xlu1 %2803  ;;  %v2799_v55 = vpop.permute.xlu0 %2798 }
 0x138   : > { %v2806_v57 = vunpack.i.h.bf16 %v2804_v54  ;;  %v2805_v58 = vunpack.i.l.bf16 %v2804_v54  ;;  %v2801_v59 = vunpack.i.h.bf16 %v2799_v55  ;;  %v2800_v61 = vunpack.i.l.bf16 %v2799_v55 }
 0x13a   : > { %1140 = vst.msk [vmem:[#allocation2 + $0xb1] sm:$0xff] %vm1116_vm13, %v2805_v58  ;;  %1138 = vst.msk [vmem:[#allocation2 + $0xa1] sm:$0xff] %vm1116_vm13, %v2800_v61 }
 0x13b   : > { %1141 = vst.msk [vmem:[#allocation2 + $0xb9] sm:$0x7f] %vm1118_vm14, %v2806_v57  ;;  %1139 = vst.msk [vmem:[#allocation2 + $0xa9] sm:$0x7f] %vm1118_vm14, %v2801_v59  ;;  %v2814_v62 = vpop.permute.xlu1 %2813  ;;  %v2809_v63 = vpop.permute.xlu0 %2808 }
 0x13c   : > { %v2816_v1 = vunpack.i.h.bf16 %v2814_v62  ;;  %v2815_v2 = vunpack.i.l.bf16 %v2814_v62  ;;  %v2811_v3 = vunpack.i.h.bf16 %v2809_v63  ;;  %v2810_v4 = vunpack.i.l.bf16 %v2809_v63 }
 0x13e   : > { %1262 = vst.msk [vmem:[#allocation2 + $0xb8] sm:$0xff] %vm1238_vm15, %v2816_v1  ;;  %1261 = vst.msk [vmem:[#allocation2 + $0xb0] sm:$0xff] %vm1238_vm15, %v2815_v2 }
 0x13f   : > { %1260 = vst.msk [vmem:[#allocation2 + $0xa8] sm:$0xff] %vm1238_vm15, %v2811_v3  ;;  %1259 = vst.msk [vmem:[#allocation2 + $0xa0] sm:$0xff] %vm1238_vm15, %v2810_v4  ;;  %v2824_v5 = vpop.permute.xlu1 %2823  ;;  %v2819_v6 = vpop.permute.xlu0 %2818 }
 0x140   : > { %v2826_v7 = vunpack.i.h.bf16 %v2824_v5  ;;  %v2825_v60 = vunpack.i.l.bf16 %v2824_v5  ;;  %v2821_v8 = vunpack.i.h.bf16 %v2819_v6  ;;  %v2820_v9 = vunpack.i.l.bf16 %v2819_v6 }
 0x142   : > { %506 = vst.msk [vmem:[#allocation2 + $0xc8] sm:$0xff] %vm482_vm7, %v2826_v7  ;;  %505 = vst.msk [vmem:[#allocation2 + $0xc0] sm:$0xff] %vm482_vm7, %v2825_v60 }
 0x143   : > { %1381 = vst.msk [vmem:[#allocation2 + $0x9f] sm:$0xfe] %vm1359_vm1, %v2820_v9  ;;  %v2834_v10 = vpop.permute.xlu1 %2833  ;;  %v2829_v11 = vpop.permute.xlu0 %2828 }
 0x144   : > { %1382 = vst.msk [vmem:[#allocation2 + $0xa7] sm:$0xff] %vm1361_vm2, %v2821_v8  ;;  %v2836_v12 = vunpack.i.h.bf16 %v2834_v10  ;;  %v2835_v13 = vunpack.i.l.bf16 %v2834_v10  ;;  %v2831_v14 = vunpack.i.h.bf16 %v2829_v11  ;;  %v2830_v15 = vunpack.i.l.bf16 %v2829_v11 }
 0x146   : > { %508 = vst.msk [vmem:[#allocation2 + $0xd8] sm:$0xff] %vm482_vm7, %v2836_v12  ;;  %507 = vst.msk [vmem:[#allocation2 + $0xd0] sm:$0xff] %vm482_vm7, %v2835_v13 }
 0x147   : > { %1384 = vst.msk [vmem:[#allocation2 + $0xb7] sm:$0xff] %vm1361_vm2, %v2831_v14  ;;  %v2844_v16 = vpop.permute.xlu1 %2843  ;;  %v2839_v17 = vpop.permute.xlu0 %2838 }
 0x148   : > { %1383 = vst.msk [vmem:[#allocation2 + $0xaf] sm:$0xfe] %vm1359_vm1, %v2830_v15  ;;  %v2846_v18 = vunpack.i.h.bf16 %v2844_v16  ;;  %v2845_v19 = vunpack.i.l.bf16 %v2844_v16  ;;  %v2841_v20 = vunpack.i.h.bf16 %v2839_v17  ;;  %v2840_v52 = vunpack.i.l.bf16 %v2839_v17 }
 0x14a   : > { %629 = vst.msk [vmem:[#allocation2 + $0xcf] sm:$0xfe] %vm603_vm8, %v2845_v19  ;;  %627 = vst.msk [vmem:[#allocation2 + $0xbf] sm:$0xfe] %vm603_vm8, %v2840_v52 }
 0x14b   : > { %v1411_v21 = vld [vmem:[#allocation2 + $0xa0] sm:$0xff]  ;;  %v1412_v22 = vld [vmem:[#allocation2 + $0xa8] sm:$0xff]  ;;  %630 = vst.msk [vmem:[#allocation2 + $0xd7] sm:$0xff] %vm605_vm9, %v2846_v18  ;;  %628 = vst.msk [vmem:[#allocation2 + $0xc7] sm:$0xff] %vm605_vm9, %v2841_v20  ;;  %v2854_v24 = vpop.permute.xlu1 %2853  ;;  %v2849_v25 = vpop.permute.xlu0 %2848 }
 0x14c   : > { %v1433_v23 = vpack.c.bf16 %v1412_v22, %v1411_v21  ;;  %v2856_v26 = vunpack.i.h.bf16 %v2854_v24  ;;  %v2855_v0 = vunpack.i.l.bf16 %v2854_v24  ;;  %v2851_v43 = vunpack.i.h.bf16 %v2849_v25 }
 0x14d   : > { %v2850_v27 = vunpack.i.l.bf16 %v2849_v25 }
 0x14e   : > { %2292 = vmatprep.mubr.msk.bf16.mxu0 %vm290_vm0, %v1433_v23  ;;  %v1414_v29 = vld [vmem:[#allocation2 + $0xb8] sm:$0xff]  ;;  %761 = vst.msk [vmem:[#allocation2 + $0xd1] sm:$0xff] %vm733_vm5, %v2855_v0 }
 0x14f   : > { %v1413_v28 = vld [vmem:[#allocation2 + $0xb0] sm:$0xff]  ;;  %762 = vst.msk [vmem:[#allocation2 + $0xd9] sm:$0x7f] %vm735_vm6, %v2856_v26  ;;  %760 = vst.msk [vmem:[#allocation2 + $0xc9] sm:$0x7f] %vm735_vm6, %v2851_v43  ;;  %v2864_v31 = vpop.permute.xlu1 %2863  ;;  %v2859_v32 = vpop.permute.xlu0 %2858 }
 0x150   : > { %759 = vst.msk [vmem:[#allocation2 + $0xc1] sm:$0xff] %vm733_vm5, %v2850_v27  ;;  %v1434_v30 = vpack.c.bf16 %v1414_v29, %v1413_v28  ;;  %v2866_v33 = vunpack.i.h.bf16 %v2864_v31  ;;  %v2865_v34 = vunpack.i.l.bf16 %v2864_v31  ;;  %v2861_v35 = vunpack.i.h.bf16 %v2859_v32 }
 0x151   : > { %v2860_v36 = vunpack.i.l.bf16 %v2859_v32 }
 0x152   : > { %2293 = vmatmul.mubr.msk.bf16.gmra.mrb[20].mxu0 %vm290_vm0, %v1434_v30  ;;  %891 = vst.msk [vmem:[#allocation2 + $0xd8] sm:$0xff] %vm863_vm10, %v2866_v33  ;;  %890 = vst.msk [vmem:[#allocation2 + $0xd0] sm:$0xff] %vm863_vm10, %v2865_v34 }
 0x153   : > { %889 = vst.msk [vmem:[#allocation2 + $0xc8] sm:$0xff] %vm863_vm10, %v2861_v35  ;;  %888 = vst.msk [vmem:[#allocation2 + $0xc0] sm:$0xff] %vm863_vm10, %v2860_v36  ;;  %v2874_v56 = vpop.permute.xlu1 %2873  ;;  %v2869_v38 = vpop.permute.xlu0 %2868 }
 0x154   : > { %v2876_v39 = vunpack.i.h.bf16 %v2874_v56  ;;  %v2875_v40 = vunpack.i.l.bf16 %v2874_v56  ;;  %v2871_v41 = vunpack.i.h.bf16 %v2869_v38  ;;  %v2870_v42 = vunpack.i.l.bf16 %v2869_v38 }
 0x156   : > { %1020 = vst.msk [vmem:[#allocation2 + $0xcf] sm:$0xfe] %vm992_vm11, %v2875_v40  ;;  %1018 = vst.msk [vmem:[#allocation2 + $0xbf] sm:$0xfe] %vm992_vm11, %v2870_v42  ;;  %v3668_v42 = vld [vmem:[%s3832_s2] ss:$0 sm:$0xff] }
 0x157   : > { %1021 = vst.msk [vmem:[#allocation2 + $0xd7] sm:$0xff] %vm994_vm12, %v2876_v39  ;;  %1019 = vst.msk [vmem:[#allocation2 + $0xc7] sm:$0xff] %vm994_vm12, %v2871_v41  ;;  %v2884_v44 = vpop.permute.xlu1 %2883  ;;  %v2879_v45 = vpop.permute.xlu0 %2878 }
 0x158   : > { %v2886_v47 = vunpack.i.h.bf16 %v2884_v44  ;;  %v2885_v46 = vunpack.i.l.bf16 %v2884_v44  ;;  %v2881_v48 = vunpack.i.h.bf16 %v2879_v45  ;;  %v2880_v49 = vunpack.i.l.bf16 %v2879_v45 }
 0x15a   : > { %1144 = vst.msk [vmem:[#allocation2 + $0xd1] sm:$0xff] %vm1116_vm13, %v2885_v46  ;;  %1142 = vst.msk [vmem:[#allocation2 + $0xc1] sm:$0xff] %vm1116_vm13, %v2880_v49 }
 0x15b   : > { %1145 = vst.msk [vmem:[#allocation2 + $0xd9] sm:$0x7f] %vm1118_vm14, %v2886_v47  ;;  %1143 = vst.msk [vmem:[#allocation2 + $0xc9] sm:$0x7f] %vm1118_vm14, %v2881_v48  ;;  %v2894_v50 = vpop.permute.xlu1 %2893  ;;  %v2889_v51 = vpop.permute.xlu0 %2888 }
 0x15c   : > { %v2896_v37 = vunpack.i.h.bf16 %v2894_v50  ;;  %v2895_v53 = vunpack.i.l.bf16 %v2894_v50  ;;  %v2891_v54 = vunpack.i.h.bf16 %v2889_v51  ;;  %v2890_v55 = vunpack.i.l.bf16 %v2889_v51 }
 0x15e   : > { %1266 = vst.msk [vmem:[#allocation2 + $0xd8] sm:$0xff] %vm1238_vm15, %v2896_v37  ;;  %1265 = vst.msk [vmem:[#allocation2 + $0xd0] sm:$0xff] %vm1238_vm15, %v2895_v53 }
 0x15f   : > { %1264 = vst.msk [vmem:[#allocation2 + $0xc8] sm:$0xff] %vm1238_vm15, %v2891_v54  ;;  %1263 = vst.msk [vmem:[#allocation2 + $0xc0] sm:$0xff] %vm1238_vm15, %v2890_v55  ;;  %v2904_v57 = vpop.permute.xlu1 %2903  ;;  %v2899_v58 = vpop.permute.xlu0 %2898 }
 0x160   : > { %v2906_v59 = vunpack.i.h.bf16 %v2904_v57  ;;  %v2905_v61 = vunpack.i.l.bf16 %v2904_v57  ;;  %v2901_v62 = vunpack.i.h.bf16 %v2899_v58  ;;  %v2900_v63 = vunpack.i.l.bf16 %v2899_v58 }
 0x162   : > { %510 = vst.msk [vmem:[#allocation2 + $0xe8] sm:$0xff] %vm482_vm7, %v2906_v59  ;;  %509 = vst.msk [vmem:[#allocation2 + $0xe0] sm:$0xff] %vm482_vm7, %v2905_v61 }
 0x163   : > { %1385 = vst.msk [vmem:[#allocation2 + $0xbf] sm:$0xfe] %vm1359_vm1, %v2900_v63  ;;  %v2914_v1 = vpop.permute.xlu1 %2913  ;;  %v2909_v2 = vpop.permute.xlu0 %2908 }
 0x164   : > { %1386 = vst.msk [vmem:[#allocation2 + $0xc7] sm:$0xff] %vm1361_vm2, %v2901_v62  ;;  %v2916_v3 = vunpack.i.h.bf16 %v2914_v1  ;;  %v2915_v4 = vunpack.i.l.bf16 %v2914_v1  ;;  %v2911_v5 = vunpack.i.h.bf16 %v2909_v2  ;;  %v2910_v6 = vunpack.i.l.bf16 %v2909_v2 }
 0x166   : > { %631 = vst.msk [vmem:[#allocation2 + $0xdf] sm:$0xfe] %vm603_vm8, %v2915_v4 }
 0x167   : > { %632 = vst.msk [vmem:[#allocation2 + $0xe7] sm:$0xff] %vm605_vm9, %v2916_v3  ;;  %v2924_v7 = vpop.permute.xlu1 %2923  ;;  %v2919_v60 = vpop.permute.xlu0 %2918 }
 0x168   : > { %1388 = vst.msk [vmem:[#allocation2 + $0xd7] sm:$0xff] %vm1361_vm2, %v2911_v5  ;;  %v2926_v8 = vunpack.i.h.bf16 %v2924_v7  ;;  %v2925_v9 = vunpack.i.l.bf16 %v2924_v7  ;;  %v2921_v10 = vunpack.i.h.bf16 %v2919_v60  ;;  %v2920_v11 = vunpack.i.l.bf16 %v2919_v60 }
 0x169   : > { %1387 = vst.msk [vmem:[#allocation2 + $0xcf] sm:$0xfe] %vm1359_vm1, %v2910_v6 }
 0x16a   : > { %764 = vst.msk [vmem:[#allocation2 + $0xe9] sm:$0x7f] %vm735_vm6, %v2921_v10 }
 0x16b   : > { %v1415_v12 = vld [vmem:[#allocation2 + $0xc0] sm:$0xff]  ;;  %v1416_v13 = vld [vmem:[#allocation2 + $0xc8] sm:$0xff]  ;;  %763 = vst.msk [vmem:[#allocation2 + $0xe1] sm:$0xff] %vm733_vm5, %v2920_v11  ;;  %v2934_v15 = vpop.permute.xlu1 %2933  ;;  %v2929_v16 = vpop.permute.xlu0 %2928 }
 0x16c   : > { %v1435_v14 = vpack.c.bf16 %v1416_v13, %v1415_v12  ;;  %892 = vst.msk [vmem:[#allocation2 + $0xe0] sm:$0xff] %vm863_vm10, %v2925_v9  ;;  %893 = vst.msk [vmem:[#allocation2 + $0xe8] sm:$0xff] %vm863_vm10, %v2926_v8  ;;  %v2936_v17 = vunpack.i.h.bf16 %v2934_v15  ;;  %v2935_v18 = vunpack.i.l.bf16 %v2934_v15  ;;  %v2931_v19 = vunpack.i.h.bf16 %v2929_v16 }
 0x16d   : > { %v2930_v20 = vunpack.i.l.bf16 %v2929_v16 }
 0x16e   : > { %2296 = vmatprep.mubr.msk.bf16.mxu0 %vm290_vm0, %v1435_v14  ;;  %1022 = vst.msk [vmem:[#allocation2 + $0xdf] sm:$0xfe] %vm992_vm11, %v2935_v18 }
 0x16f   : > { %v1418_v21 = vld [vmem:[#allocation2 + $0xd8] sm:$0xff]  ;;  %1023 = vst.msk [vmem:[#allocation2 + $0xe7] sm:$0xff] %vm994_vm12, %v2936_v17  ;;  %v2944_v23 = vpop.permute.xlu1 %2943  ;;  %v2939_v24 = vpop.permute.xlu0 %2938 }
 0x170   : > { %v1417_v52 = vld [vmem:[#allocation2 + $0xd0] sm:$0xff]  ;;  %512 = vst.msk [vmem:[#allocation2 + $0xf8] sm:$0xff] %vm482_vm7, %v2931_v19  ;;  %511 = vst.msk [vmem:[#allocation2 + $0xf0] sm:$0xff] %vm482_vm7, %v2930_v20  ;;  %v2946_v25 = vunpack.i.h.bf16 %v2944_v23  ;;  %v2945_v26 = vunpack.i.l.bf16 %v2944_v23  ;;  %v2941_v0 = vunpack.i.h.bf16 %v2939_v24  ;;  %v2940_v43 = vunpack.i.l.bf16 %v2939_v24 }
 0x171   : > { %v1436_v22 = vpack.c.bf16 %v1418_v21, %v1417_v52 }
 0x172   : > { %1146 = vst.msk [vmem:[#allocation2 + $0xe1] sm:$0xff] %vm1116_vm13, %v2945_v26 }
 0x173   : > { %2297 = vmatmul.mubr.msk.bf16.gmra.mrb[24].mxu0 %vm290_vm0, %v1436_v22  ;;  %1147 = vst.msk [vmem:[#allocation2 + $0xe9] sm:$0x7f] %vm1118_vm14, %v2946_v25  ;;  %v2954_v27 = vpop.permute.xlu1 %2953  ;;  %v2949_v28 = vpop.permute.xlu0 %2948 }
 0x174   : > { %633 = vst.msk [vmem:[#allocation2 + $0xef] sm:$0xfe] %vm603_vm8, %v2940_v43  ;;  %v2956_v29 = vunpack.i.h.bf16 %v2954_v27  ;;  %v2955_v30 = vunpack.i.l.bf16 %v2954_v27  ;;  %v2951_v31 = vunpack.i.h.bf16 %v2949_v28  ;;  %v2950_v32 = vunpack.i.l.bf16 %v2949_v28 }
 0x175   : > { %634 = vst.msk [vmem:[#allocation2 + $0xf7] sm:$0xff] %vm605_vm9, %v2941_v0  ;;  %vm1799_vm8 = vcmask 64512  }
 0x176   : > { %1268 = vst.msk [vmem:[#allocation2 + $0xe8] sm:$0xff] %vm1238_vm15, %v2956_v29  ;;  %1267 = vst.msk [vmem:[#allocation2 + $0xe0] sm:$0xff] %vm1238_vm15, %v2955_v30 }
 0x177   : > { %765 = vst.msk [vmem:[#allocation2 + $0xf1] sm:$0xff] %vm733_vm5, %v2950_v32  ;;  %v2964_v33 = vpop.permute.xlu1 %2963  ;;  %v2959_v34 = vpop.permute.xlu0 %2958 }
 0x178   : > { %766 = vst.msk [vmem:[#allocation2 + $0xf9] sm:$0x7f] %vm735_vm6, %v2951_v31  ;;  %v2966_v35 = vunpack.i.h.bf16 %v2964_v33  ;;  %v2965_v36 = vunpack.i.l.bf16 %v2964_v33  ;;  %v2961_v56 = vunpack.i.h.bf16 %v2959_v34  ;;  %v2960_v38 = vunpack.i.l.bf16 %v2959_v34 }
 0x17a   : > { %1389 = vst.msk [vmem:[#allocation2 + $0xdf] sm:$0xfe] %vm1359_vm1, %v2965_v36 }
 0x17b   : > { %1390 = vst.msk [vmem:[#allocation2 + $0xe7] sm:$0xff] %vm1361_vm2, %v2966_v35  ;;  %v2969_v39 = vpop.permute.xlu0 %2968 }
 0x17c   : > { %895 = vst.msk [vmem:[#allocation2 + $0xf8] sm:$0xff] %vm863_vm10, %v2961_v56  ;;  %894 = vst.msk [vmem:[#allocation2 + $0xf0] sm:$0xff] %vm863_vm10, %v2960_v38  ;;  %v2971_v40 = vunpack.i.h.bf16 %v2969_v39  ;;  %v2970_v41 = vunpack.i.l.bf16 %v2969_v39 }
 0x17e   : > { %1024 = vst.msk [vmem:[#allocation2 + $0xef] sm:$0xfe] %vm992_vm11, %v2970_v41 }
 0x17f   : > { %1025 = vst.msk [vmem:[#allocation2 + $0xf7] sm:$0xff] %vm994_vm12, %v2971_v40 }
 0x182   : > { %v1419_v44 = vld [vmem:[#allocation2 + $0xe0] sm:$0xff]  ;;  %v1420_v45 = vld [vmem:[#allocation2 + $0xe8] sm:$0xff] }
 0x183   : > { %v1437_v47 = vpack.c.bf16 %v1420_v45, %v1419_v44 }
 0x185   : > { %v2274_v46 = vpop.f32.mrb[0].mxu0  ;;  %2300 = vmatprep.mubr.msk.bf16.mxu0 %vm290_vm0, %v1437_v47 }
 0x186   : > { %v1561_v48 = vadd.f32 %v2274_v46, %v3668_v42  ;;  %v1552_v49 = vpop.f32.mrb[1].mxu0  ;;  %v1421_v37 = vld [vmem:[#allocation2 + $0xf0] sm:$0xff]  ;;  %v1422_v53 = vld [vmem:[#allocation2 + $0xf8] sm:$0xff] }
 0x187   : > { %v1553_v50 = vadd.f32 %v3668_v42, %v1552_v49  ;;  %v2275_v51 = vpop.f32.mrb[2].mxu0  ;;  %v1438_v58 = vpack.c.bf16 %v1422_v53, %v1421_v37 }
 0x188   : > { %v1713_v54 = vmul.f32 0.1, %v1561_v48  ;;  %v1564_v55 = vadd.f32 %v2275_v51, %v3668_v42  ;;  %v1555_v57 = vpop.f32.mrb[3].mxu0  ;;  %vm1681_vm4 = vcmp.gt.f32.partialorder %v1561_v48, 0.0 }
 0x189   : > { %v1711_v59 = vmul.f32 0.1, %v1553_v50  ;;  %v1556_v61 = vadd.f32 %v3668_v42, %v1555_v57  ;;  %2301 = vmatmul.mubr.msk.bf16.gmra.mrb[28].mxu0 %vm290_vm0, %v1438_v58  ;;  %vm1679_vm6 = vcmp.gt.f32.partialorder %v1553_v50, 0.0 }
 0x18a   : > { %vm1682_vm5 = vcmp.gt.f32.partialorder %v1564_v55, 0.0  ;;  %v1714_v62 = vmul.f32 0.1, %v1564_v55  ;;  %v1745_v1 = vsel %vm1681_vm4, %v1561_v48, %v1713_v54 }
 0x18b   : > { %v1712_v63 = vmul.f32 0.1, %v1556_v61  ;;  %vm1680_vm7 = vcmp.gt.f32.partialorder %v1556_v61, 0.0  ;;  %v1743_v4 = vsel %vm1679_vm6, %v1553_v50, %v1711_v59 }
 0x18c   : > { %v1746_v2 = vsel %vm1682_vm5, %v1564_v55, %v1714_v62 }
 0x18d   : > { %v1776_v3 = vpack.c.bf16 %v1746_v2, %v1745_v1  ;;  %v1744_v5 = vsel %vm1680_vm7, %v1556_v61, %v1712_v63 }
 0x18e   : > { %v1775_v6 = vpack.c.bf16 %v1744_v5, %v1743_v4 }
 0x190   : > { %2306 = vmatprep.mubr.msk.bf16.mxu1 %vm1799_vm8, %v1775_v6 }
 0x191   : > { %2307 = vmatmul.mubr.msk.bf16.vlgmr.msra.gmra.mrb[0].mxu1 %vm1799_vm8, %v1776_v3 }
 0x1a5   : > { %v2278_v7 = vpop.f32.mrb[4].mxu0 }
 0x1a6   : > { %v1577_v60 = vadd.f32 %v2278_v7, %v3668_v42  ;;  %v1568_v8 = vpop.f32.mrb[5].mxu0 }
 0x1a7   : > { %v1569_v9 = vadd.f32 %v3668_v42, %v1568_v8  ;;  %v2279_v10 = vpop.f32.mrb[6].mxu0 }
 0x1a8   : > { %v1717_v11 = vmul.f32 0.1, %v1577_v60  ;;  %v1580_v12 = vadd.f32 %v2279_v10, %v3668_v42  ;;  %v1571_v13 = vpop.f32.mrb[7].mxu0  ;;  %vm1685_vm0 = vcmp.gt.f32.partialorder %v1577_v60, 0.0 }
 0x1a9   : > { %v1715_v14 = vmul.f32 0.1, %v1569_v9  ;;  %v1572_v15 = vadd.f32 %v3668_v42, %v1571_v13  ;;  %vm1683_vm9 = vcmp.gt.f32.partialorder %v1569_v9, 0.0 }
 0x1aa   : > { %vm1686_vm10 = vcmp.gt.f32.partialorder %v1580_v12, 0.0  ;;  %v1718_v16 = vmul.f32 0.1, %v1580_v12  ;;  %v1749_v18 = vsel %vm1685_vm0, %v1577_v60, %v1717_v11 }
 0x1ab   : > { %vm1684_vm11 = vcmp.gt.f32.partialorder %v1572_v15, 0.0  ;;  %v1716_v17 = vmul.f32 0.1, %v1572_v15  ;;  %v1747_v20 = vsel %vm1683_vm9, %v1569_v9, %v1715_v14 }
 0x1ac   : > { %v1750_v19 = vsel %vm1686_vm10, %v1580_v12, %v1718_v16 }
 0x1ad   : > { %v1778_v52 = vpack.c.bf16 %v1750_v19, %v1749_v18  ;;  %v1748_v21 = vsel %vm1684_vm11, %v1572_v15, %v1716_v17 }
 0x1ae   : > { %v1777_v22 = vpack.c.bf16 %v1748_v21, %v1747_v20 }
 0x1b0   : > { %2310 = vmatprep.mubr.msk.bf16.mxu1 %vm1799_vm8, %v1777_v22 }
 0x1b1   : > { %2311 = vmatmul.mubr.msk.bf16.gmra.mrb[4].mxu1 %vm1799_vm8, %v1778_v52 }
 0x1c5   : > { %v2282_v23 = vpop.f32.mrb[8].mxu0 }
 0x1c6   : > { %v1593_v24 = vadd.f32 %v2282_v23, %v3668_v42  ;;  %v1584_v25 = vpop.f32.mrb[9].mxu0 }
 0x1c7   : > { %v1585_v26 = vadd.f32 %v3668_v42, %v1584_v25  ;;  %v2283_v0 = vpop.f32.mrb[10].mxu0 }
 0x1c8   : > { %v1721_v43 = vmul.f32 0.1, %v1593_v24  ;;  %v1596_v27 = vadd.f32 %v2283_v0, %v3668_v42  ;;  %v1587_v28 = vpop.f32.mrb[11].mxu0  ;;  %vm1689_vm12 = vcmp.gt.f32.partialorder %v1593_v24, 0.0 }
 0x1c9   : > { %v1719_v29 = vmul.f32 0.1, %v1585_v26  ;;  %v1588_v30 = vadd.f32 %v3668_v42, %v1587_v28  ;;  %vm1687_vm13 = vcmp.gt.f32.partialorder %v1585_v26, 0.0 }
 0x1ca   : > { %vm1690_vm14 = vcmp.gt.f32.partialorder %v1596_v27, 0.0  ;;  %v1722_v31 = vmul.f32 0.1, %v1596_v27  ;;  %v1753_v33 = vsel %vm1689_vm12, %v1593_v24, %v1721_v43 }
 0x1cb   : > { %vm1688_vm15 = vcmp.gt.f32.partialorder %v1588_v30, 0.0  ;;  %v1720_v32 = vmul.f32 0.1, %v1588_v30  ;;  %v1751_v35 = vsel %vm1687_vm13, %v1585_v26, %v1719_v29 }
 0x1cc   : > { %v1754_v34 = vsel %vm1690_vm14, %v1596_v27, %v1722_v31 }
 0x1cd   : > { %v1780_v36 = vpack.c.bf16 %v1754_v34, %v1753_v33  ;;  %v1752_v56 = vsel %vm1688_vm15, %v1588_v30, %v1720_v32 }
 0x1ce   : > { %v1779_v38 = vpack.c.bf16 %v1752_v56, %v1751_v35 }
 0x1d0   : > { %2314 = vmatprep.mubr.msk.bf16.mxu1 %vm1799_vm8, %v1779_v38 }
 0x1d1   : > { %2315 = vmatmul.mubr.msk.bf16.gmra.mrb[8].mxu1 %vm1799_vm8, %v1780_v36 }
 0x1e5   : > { %v2286_v39 = vpop.f32.mrb[12].mxu0 }
 0x1e6   : > { %v1609_v40 = vadd.f32 %v2286_v39, %v3668_v42  ;;  %v1600_v41 = vpop.f32.mrb[13].mxu0 }
 0x1e7   : > { %v1601_v44 = vadd.f32 %v3668_v42, %v1600_v41  ;;  %v2287_v45 = vpop.f32.mrb[14].mxu0 }
 0x1e8   : > { %v1725_v47 = vmul.f32 0.1, %v1609_v40  ;;  %v1612_v46 = vadd.f32 %v2287_v45, %v3668_v42  ;;  %v1603_v48 = vpop.f32.mrb[15].mxu0  ;;  %vm1693_vm1 = vcmp.gt.f32.partialorder %v1609_v40, 0.0 }
 0x1e9   : > { %v1723_v49 = vmul.f32 0.1, %v1601_v44  ;;  %v1604_v50 = vadd.f32 %v3668_v42, %v1603_v48  ;;  %vm1691_vm2 = vcmp.gt.f32.partialorder %v1601_v44, 0.0 }
 0x1ea   : > { %vm1694_vm3 = vcmp.gt.f32.partialorder %v1612_v46, 0.0  ;;  %v1726_v51 = vmul.f32 0.1, %v1612_v46  ;;  %v1757_v53 = vsel %vm1693_vm1, %v1609_v40, %v1725_v47 }
 0x1eb   : > { %vm1692_vm4 = vcmp.gt.f32.partialorder %v1604_v50, 0.0  ;;  %v1724_v37 = vmul.f32 0.1, %v1604_v50  ;;  %v1755_v55 = vsel %vm1691_vm2, %v1601_v44, %v1723_v49 }
 0x1ec   : > { %v1758_v54 = vsel %vm1694_vm3, %v1612_v46, %v1726_v51 }
 0x1ed   : > { %v1782_v57 = vpack.c.bf16 %v1758_v54, %v1757_v53  ;;  %v1756_v58 = vsel %vm1692_vm4, %v1604_v50, %v1724_v37 }
 0x1ee   : > { %v1781_v59 = vpack.c.bf16 %v1756_v58, %v1755_v55 }
 0x1f0   : > { %2318 = vmatprep.mubr.msk.bf16.mxu1 %vm1799_vm8, %v1781_v59 }
 0x1f1   : > { %2319 = vmatmul.mubr.msk.bf16.gmra.mrb[12].mxu1 %vm1799_vm8, %v1782_v57 }
 0x205   : > { %v2290_v61 = vpop.f32.mrb[16].mxu0 }
 0x206   : > { %v1625_v62 = vadd.f32 %v2290_v61, %v3668_v42  ;;  %v1616_v63 = vpop.f32.mrb[17].mxu0 }
 0x207   : > { %v1617_v1 = vadd.f32 %v3668_v42, %v1616_v63  ;;  %v2291_v2 = vpop.f32.mrb[18].mxu0  ;;  %v3722_v63 = vld [vmem:[%s3834_s4] ss:$0 sm:$0xff] }
 0x208   : > { %v1729_v3 = vmul.f32 0.1, %v1625_v62  ;;  %v1628_v4 = vadd.f32 %v2291_v2, %v3668_v42  ;;  %v1619_v5 = vpop.f32.mrb[19].mxu0  ;;  %vm1697_vm5 = vcmp.gt.f32.partialorder %v1625_v62, 0.0 }
 0x209   : > { %v1727_v6 = vmul.f32 0.1, %v1617_v1  ;;  %v1620_v7 = vadd.f32 %v3668_v42, %v1619_v5  ;;  %vm1695_vm6 = vcmp.gt.f32.partialorder %v1617_v1, 0.0 }
 0x20a   : > { %vm1698_vm7 = vcmp.gt.f32.partialorder %v1628_v4, 0.0  ;;  %v1730_v60 = vmul.f32 0.1, %v1628_v4  ;;  %v1761_v9 = vsel %vm1697_vm5, %v1625_v62, %v1729_v3 }
 0x20b   : > { %vm1696_vm0 = vcmp.gt.f32.partialorder %v1620_v7, 0.0  ;;  %v1728_v8 = vmul.f32 0.1, %v1620_v7  ;;  %v1759_v11 = vsel %vm1695_vm6, %v1617_v1, %v1727_v6  ;;  %vm2013_vm6 = vcmask 171008  }
 0x20c   : > { %v1762_v10 = vsel %vm1698_vm7, %v1628_v4, %v1730_v60 }
 0x20d   : > { %v1784_v12 = vpack.c.bf16 %v1762_v10, %v1761_v9  ;;  %v1760_v13 = vsel %vm1696_vm0, %v1620_v7, %v1728_v8 }
 0x20e   : > { %v1783_v14 = vpack.c.bf16 %v1760_v13, %v1759_v11 }
 0x210   : > { %2322 = vmatprep.mubr.msk.bf16.mxu1 %vm1799_vm8, %v1783_v14 }
 0x211   : > { %2323 = vmatmul.mubr.msk.bf16.gmra.mrb[16].mxu1 %vm1799_vm8, %v1784_v12 }
 0x225   : > { %v2294_v15 = vpop.f32.mrb[20].mxu0 }
 0x226   : > { %v1641_v16 = vadd.f32 %v2294_v15, %v3668_v42  ;;  %v1632_v17 = vpop.f32.mrb[21].mxu0 }
 0x227   : > { %v1633_v18 = vadd.f32 %v3668_v42, %v1632_v17  ;;  %v2295_v19 = vpop.f32.mrb[22].mxu0 }
 0x228   : > { %v1733_v20 = vmul.f32 0.1, %v1641_v16  ;;  %v1644_v52 = vadd.f32 %v2295_v19, %v3668_v42  ;;  %v1635_v21 = vpop.f32.mrb[23].mxu0  ;;  %vm1701_vm9 = vcmp.gt.f32.partialorder %v1641_v16, 0.0 }
 0x229   : > { %v1731_v22 = vmul.f32 0.1, %v1633_v18  ;;  %v1636_v23 = vadd.f32 %v3668_v42, %v1635_v21  ;;  %vm1699_vm10 = vcmp.gt.f32.partialorder %v1633_v18, 0.0 }
 0x22a   : > { %vm1702_vm11 = vcmp.gt.f32.partialorder %v1644_v52, 0.0  ;;  %v1734_v24 = vmul.f32 0.1, %v1644_v52  ;;  %v1765_v26 = vsel %vm1701_vm9, %v1641_v16, %v1733_v20 }
 0x22b   : > { %vm1700_vm12 = vcmp.gt.f32.partialorder %v1636_v23, 0.0  ;;  %v1732_v25 = vmul.f32 0.1, %v1636_v23  ;;  %v1763_v43 = vsel %vm1699_vm10, %v1633_v18, %v1731_v22 }
 0x22c   : > { %v1766_v0 = vsel %vm1702_vm11, %v1644_v52, %v1734_v24 }
 0x22d   : > { %v1786_v27 = vpack.c.bf16 %v1766_v0, %v1765_v26  ;;  %v1764_v28 = vsel %vm1700_vm12, %v1636_v23, %v1732_v25 }
 0x22e   : > { %v1785_v29 = vpack.c.bf16 %v1764_v28, %v1763_v43 }
 0x230   : > { %2326 = vmatprep.mubr.msk.bf16.mxu1 %vm1799_vm8, %v1785_v29 }
 0x231   : > { %2327 = vmatmul.mubr.msk.bf16.gmra.mrb[20].mxu1 %vm1799_vm8, %v1786_v27 }
 0x246   : > { %v2298_v30 = vpop.f32.mrb[24].mxu0 }
 0x247   : > { %v1657_v31 = vadd.f32 %v2298_v30, %v3668_v42  ;;  %v1648_v32 = vpop.f32.mrb[25].mxu0 }
 0x248   : > { %v1649_v33 = vadd.f32 %v3668_v42, %v1648_v32  ;;  %v2299_v34 = vpop.f32.mrb[26].mxu0 }
 0x249   : > { %v1737_v35 = vmul.f32 0.1, %v1657_v31  ;;  %v1660_v36 = vadd.f32 %v2299_v34, %v3668_v42  ;;  %v1651_v56 = vpop.f32.mrb[27].mxu0  ;;  %vm1705_vm13 = vcmp.gt.f32.partialorder %v1657_v31, 0.0 }
 0x24a   : > { %v1735_v38 = vmul.f32 0.1, %v1649_v33  ;;  %v1652_v39 = vadd.f32 %v3668_v42, %v1651_v56  ;;  %vm1703_vm14 = vcmp.gt.f32.partialorder %v1649_v33, 0.0 }
 0x24b   : > { %vm1706_vm15 = vcmp.gt.f32.partialorder %v1660_v36, 0.0  ;;  %v1738_v40 = vmul.f32 0.1, %v1660_v36  ;;  %v1769_v44 = vsel %vm1705_vm13, %v1657_v31, %v1737_v35 }
 0x24c   : > { %vm1704_vm1 = vcmp.gt.f32.partialorder %v1652_v39, 0.0  ;;  %v1736_v41 = vmul.f32 0.1, %v1652_v39  ;;  %v1767_v47 = vsel %vm1703_vm14, %v1649_v33, %v1735_v38 }
 0x24d   : > { %v1770_v45 = vsel %vm1706_vm15, %v1660_v36, %v1738_v40 }
 0x24e   : > { %v1788_v46 = vpack.c.bf16 %v1770_v45, %v1769_v44  ;;  %v1768_v48 = vsel %vm1704_vm1, %v1652_v39, %v1736_v41 }
 0x24f   : > { %v1787_v49 = vpack.c.bf16 %v1768_v48, %v1767_v47 }
 0x251   : > { %2330 = vmatprep.mubr.msk.bf16.mxu1 %vm1799_vm8, %v1787_v49 }
 0x252   : > { %2331 = vmatmul.mubr.msk.bf16.gmra.mrb[24].mxu1 %vm1799_vm8, %v1788_v46 }
 0x25c   : > { %v2302_v50 = vpop.f32.mrb[28].mxu0 }
 0x25d   : > { %v1673_v51 = vadd.f32 %v2302_v50, %v3668_v42  ;;  %v1664_v37 = vpop.f32.mrb[29].mxu0 }
 0x25e   : > { %v1665_v53 = vadd.f32 %v3668_v42, %v1664_v37  ;;  %v2303_v54 = vpop.f32.mrb[30].mxu0 }
 0x25f   : > { %v1741_v55 = vmul.f32 0.1, %v1673_v51  ;;  %v1676_v57 = vadd.f32 %v2303_v54, %v3668_v42  ;;  %v1667_v58 = vpop.f32.mrb[31].mxu0  ;;  %vm1709_vm2 = vcmp.gt.f32.partialorder %v1673_v51, 0.0 }
 0x260   : > { %v1739_v59 = vmul.f32 0.1, %v1665_v53  ;;  %v1668_v61 = vadd.f32 %v3668_v42, %v1667_v58  ;;  %vm1707_vm3 = vcmp.gt.f32.partialorder %v1665_v53, 0.0 }
 0x261   : > { %vm1710_vm4 = vcmp.gt.f32.partialorder %v1676_v57, 0.0  ;;  %v1742_v62 = vmul.f32 0.1, %v1676_v57  ;;  %v1773_v2 = vsel %vm1709_vm2, %v1673_v51, %v1741_v55 }
 0x262   : > { %vm1708_vm5 = vcmp.gt.f32.partialorder %v1668_v61, 0.0  ;;  %v1740_v1 = vmul.f32 0.1, %v1668_v61  ;;  %v1771_v4 = vsel %vm1707_vm3, %v1665_v53, %v1739_v59 }
 0x263   : > { %v1774_v3 = vsel %vm1710_vm4, %v1676_v57, %v1742_v62 }
 0x264   : > { %v2308_v42 = vpop.f32.mrb[0].mxu1  ;;  %v1790_v5 = vpack.c.bf16 %v1774_v3, %v1773_v2  ;;  %v1772_v6 = vsel %vm1708_vm5, %v1668_v61, %v1740_v1 }
 0x265   : > { %v1895_v7 = vadd.f32 %v2308_v42, %v3722_v63  ;;  %v1886_v60 = vpop.f32.mrb[1].mxu1  ;;  %v1789_v8 = vpack.c.bf16 %v1772_v6, %v1771_v4 }
 0x266   : > { %v1887_v9 = vadd.f32 %v3722_v63, %v1886_v60  ;;  %v2309_v10 = vpop.f32.mrb[2].mxu1 }
 0x267   : > { %2016 = vst.msk [vmem:[%s3727_s25 + $0x10] sm:$0xff] %vm2013_vm6, %v1895_v7  ;;  %v1898_v11 = vadd.f32 %v2309_v10, %v3722_v63  ;;  %v1889_v12 = vpop.f32.mrb[3].mxu1  ;;  %2334 = vmatprep.mubr.msk.bf16.mxu1 %vm1799_vm8, %v1789_v8 }
 0x268   : > { %2014 = vst.msk [vmem:[%s3727_s25] sm:$0xff] %vm2013_vm6, %v1887_v9  ;;  %v1890_v13 = vadd.f32 %v3722_v63, %v1889_v12  ;;  %2335 = vmatmul.mubr.msk.bf16.gmra.mrb[28].mxu1 %vm1799_vm8, %v1790_v5 }
 0x269   : > { %2017 = vst.msk [vmem:[%s3727_s25 + $0x18] sm:$0xff] %vm2013_vm6, %v1898_v11 }
 0x26a   : > { %2015 = vst.msk [vmem:[%s3727_s25 + $0x8] sm:$0xff] %vm2013_vm6, %v1890_v13 }
 0x284   : > { %v2312_v14 = vpop.f32.mrb[4].mxu1 }
 0x285   : > { %v1911_v15 = vadd.f32 %v2312_v14, %v3722_v63  ;;  %v1902_v16 = vpop.f32.mrb[5].mxu1 }
 0x286   : > { %v1903_v17 = vadd.f32 %v3722_v63, %v1902_v16  ;;  %v2313_v18 = vpop.f32.mrb[6].mxu1 }
 0x287   : > { %2020 = vst.msk [vmem:[%s3727_s25 + $0x30] sm:$0xff] %vm2013_vm6, %v1911_v15  ;;  %v1914_v19 = vadd.f32 %v2313_v18, %v3722_v63  ;;  %v1905_v20 = vpop.f32.mrb[7].mxu1 }
 0x288   : > { %2018 = vst.msk [vmem:[%s3727_s25 + $0x20] sm:$0xff] %vm2013_vm6, %v1903_v17  ;;  %v1906_v52 = vadd.f32 %v3722_v63, %v1905_v20 }
 0x289   : > { %2021 = vst.msk [vmem:[%s3727_s25 + $0x38] sm:$0xff] %vm2013_vm6, %v1914_v19 }
 0x28a   : > { %2019 = vst.msk [vmem:[%s3727_s25 + $0x28] sm:$0xff] %vm2013_vm6, %v1906_v52 }
 0x2a4   : > { %v2316_v21 = vpop.f32.mrb[8].mxu1 }
 0x2a5   : > { %v1927_v22 = vadd.f32 %v2316_v21, %v3722_v63  ;;  %v1918_v23 = vpop.f32.mrb[9].mxu1 }
 0x2a6   : > { %v1919_v24 = vadd.f32 %v3722_v63, %v1918_v23  ;;  %v2317_v25 = vpop.f32.mrb[10].mxu1 }
 0x2a7   : > { %2024 = vst.msk [vmem:[%s3727_s25 + $0x50] sm:$0xff] %vm2013_vm6, %v1927_v22  ;;  %v1930_v26 = vadd.f32 %v2317_v25, %v3722_v63  ;;  %v1921_v0 = vpop.f32.mrb[11].mxu1 }
 0x2a8   : > { %2022 = vst.msk [vmem:[%s3727_s25 + $0x40] sm:$0xff] %vm2013_vm6, %v1919_v24  ;;  %v1922_v43 = vadd.f32 %v3722_v63, %v1921_v0 }
 0x2a9   : > { %2025 = vst.msk [vmem:[%s3727_s25 + $0x58] sm:$0xff] %vm2013_vm6, %v1930_v26 }
 0x2aa   : > { %2023 = vst.msk [vmem:[%s3727_s25 + $0x48] sm:$0xff] %vm2013_vm6, %v1922_v43 }
 0x2c4   : > { %v2320_v27 = vpop.f32.mrb[12].mxu1 }
 0x2c5   : > { %v1943_v28 = vadd.f32 %v2320_v27, %v3722_v63  ;;  %v1934_v29 = vpop.f32.mrb[13].mxu1 }
 0x2c6   : > { %v1935_v30 = vadd.f32 %v3722_v63, %v1934_v29  ;;  %v2321_v31 = vpop.f32.mrb[14].mxu1 }
 0x2c7   : > { %2028 = vst.msk [vmem:[%s3727_s25 + $0x70] sm:$0xff] %vm2013_vm6, %v1943_v28  ;;  %v1946_v32 = vadd.f32 %v2321_v31, %v3722_v63  ;;  %v1937_v33 = vpop.f32.mrb[15].mxu1 }
 0x2c8   : > { %2026 = vst.msk [vmem:[%s3727_s25 + $0x60] sm:$0xff] %vm2013_vm6, %v1935_v30  ;;  %v1938_v34 = vadd.f32 %v3722_v63, %v1937_v33 }
 0x2c9   : > { %2029 = vst.msk [vmem:[%s3727_s25 + $0x78] sm:$0xff] %vm2013_vm6, %v1946_v32 }
 0x2ca   : > { %2027 = vst.msk [vmem:[%s3727_s25 + $0x68] sm:$0xff] %vm2013_vm6, %v1938_v34 }
 0x2e4   : > { %v2324_v35 = vpop.f32.mrb[16].mxu1 }
 0x2e5   : > { %v1959_v36 = vadd.f32 %v2324_v35, %v3722_v63  ;;  %v1950_v56 = vpop.f32.mrb[17].mxu1 }
 0x2e6   : > { %v1951_v38 = vadd.f32 %v3722_v63, %v1950_v56  ;;  %v2325_v39 = vpop.f32.mrb[18].mxu1 }
 0x2e7   : > { %2032 = vst.msk [vmem:[%s3727_s25 + $0x90] sm:$0xff] %vm2013_vm6, %v1959_v36  ;;  %v1962_v40 = vadd.f32 %v2325_v39, %v3722_v63  ;;  %v1953_v41 = vpop.f32.mrb[19].mxu1 }
 0x2e8   : > { %2030 = vst.msk [vmem:[%s3727_s25 + $0x80] sm:$0xff] %vm2013_vm6, %v1951_v38  ;;  %v1954_v44 = vadd.f32 %v3722_v63, %v1953_v41 }
 0x2e9   : > { %2033 = vst.msk [vmem:[%s3727_s25 + $0x98] sm:$0xff] %vm2013_vm6, %v1962_v40 }
 0x2ea   : > { %2031 = vst.msk [vmem:[%s3727_s25 + $0x88] sm:$0xff] %vm2013_vm6, %v1954_v44 }
 0x304   : > { %v2328_v45 = vpop.f32.mrb[20].mxu1 }
 0x305   : > { %v1975_v47 = vadd.f32 %v2328_v45, %v3722_v63  ;;  %v1966_v46 = vpop.f32.mrb[21].mxu1 }
 0x306   : > { %v1967_v48 = vadd.f32 %v3722_v63, %v1966_v46  ;;  %v2329_v49 = vpop.f32.mrb[22].mxu1 }
 0x307   : > { %2036 = vst.msk [vmem:[%s3727_s25 + $0xb0] sm:$0xff] %vm2013_vm6, %v1975_v47  ;;  %v1978_v50 = vadd.f32 %v2329_v49, %v3722_v63  ;;  %v1969_v51 = vpop.f32.mrb[23].mxu1 }
 0x308   : > { %2034 = vst.msk [vmem:[%s3727_s25 + $0xa0] sm:$0xff] %vm2013_vm6, %v1967_v48  ;;  %v1970_v37 = vadd.f32 %v3722_v63, %v1969_v51 }
 0x309   : > { %2037 = vst.msk [vmem:[%s3727_s25 + $0xb8] sm:$0xff] %vm2013_vm6, %v1978_v50 }
 0x30a   : > { %2035 = vst.msk [vmem:[%s3727_s25 + $0xa8] sm:$0xff] %vm2013_vm6, %v1970_v37 }
 0x325   : > { %v2332_v53 = vpop.f32.mrb[24].mxu1 }
 0x326   : > { %v1991_v54 = vadd.f32 %v2332_v53, %v3722_v63  ;;  %v1982_v55 = vpop.f32.mrb[25].mxu1 }
 0x327   : > { %v1983_v57 = vadd.f32 %v3722_v63, %v1982_v55  ;;  %v2333_v58 = vpop.f32.mrb[26].mxu1 }
 0x328   : > { %2040 = vst.msk [vmem:[%s3727_s25 + $0xd0] sm:$0xff] %vm2013_vm6, %v1991_v54  ;;  %v1994_v59 = vadd.f32 %v2333_v58, %v3722_v63  ;;  %v1985_v61 = vpop.f32.mrb[27].mxu1 }
 0x329   : > { %2038 = vst.msk [vmem:[%s3727_s25 + $0xc0] sm:$0xff] %vm2013_vm6, %v1983_v57  ;;  %v1986_v62 = vadd.f32 %v3722_v63, %v1985_v61 }
 0x32a   : > { %2041 = vst.msk [vmem:[%s3727_s25 + $0xd8] sm:$0xff] %vm2013_vm6, %v1994_v59 }
 0x32b   : > { %2039 = vst.msk [vmem:[%s3727_s25 + $0xc8] sm:$0xff] %vm2013_vm6, %v1986_v62 }
 0x33b   : > { %v2336_v1 = vpop.f32.mrb[28].mxu1 }
 0x33c   : > { %v2007_v2 = vadd.f32 %v2336_v1, %v3722_v63  ;;  %v1998_v3 = vpop.f32.mrb[29].mxu1 }
 0x33d   : > { %v1999_v42 = vadd.f32 %v3722_v63, %v1998_v3  ;;  %v2337_v4 = vpop.f32.mrb[30].mxu1 }
 0x33e   : > { %2044 = vst.msk [vmem:[%s3727_s25 + $0xf0] sm:$0xff] %vm2013_vm6, %v2007_v2  ;;  %v2010_v5 = vadd.f32 %v2337_v4, %v3722_v63  ;;  %v2001_v6 = vpop.f32.mrb[31].mxu1 }
 0x33f   : > { %2042 = vst.msk [vmem:[%s3727_s25 + $0xe0] sm:$0xff] %vm2013_vm6, %v1999_v42  ;;  %v2002_v7 = vadd.f32 %v3722_v63, %v2001_v6 }
 0x340   : > { %2045 = vst.msk [vmem:[%s3727_s25 + $0xf8] sm:$0xff] %vm2013_vm6, %v2010_v5 }
 0x341   : > { %2043 = vst.msk [vmem:[%s3727_s25 + $0xe8] sm:$0xff] %vm2013_vm6, %v2002_v7 }
 0x342 PF: > { %s15_s18 = sadd.s32 1, %s2981_s18  }
 0x343   : > { %p12_p4 = scmp.ge.s32.totalorder %s15_s18, 4  }
 0x345   :  { %14 = sbr.rel (!%p12_p4) target bundleno = 1 (0x1), region = 72 }

</bundles_post_ra>
